<compile_context>
chip_gen: v5e
topology: v5e:2x2
jax: 0.10.0
libtpu: 0.0.40
codegen_flags: <defaults>
</compile_context>

<pallas_src>
import functools

import jax
import jax.numpy as jnp
from jax.experimental import pallas as pl
from jax.experimental.pallas import tpu as pltpu


def _round_up(x, m):
    return ((x + m - 1) // m) * m


def _pick_tm(k_pad, d, z_itembytes, hw, batch):
    """Rows-per-tile: as large as the VMEM budget allows, with grid >= 2 if possible."""
    # Live bytes per flattened row: ~5 (Kp, tm) f32 intermediates on the score
    # path + double-buffered (tm, D) input and (D, tm) output blocks.
    per_row = 5 * k_pad * 4 + 4 * d * max(int(z_itembytes), 4)
    budget = 22 * 1024 * 1024
    tm = (budget // per_row) // 128 * 128
    tm = max(128, min(4096, tm))
    if batch == 1 and hw > 128:
        # v7x has 2 TensorCores: make sure the HW axis alone yields >= 2 steps.
        tm = min(tm, _round_up(pl.cdiv(hw, 2), 128))
    if hw <= tm:
        return hw          # one full tile per batch element (block == full dim)
    return tm              # multiple of 128; ragged last tile masked in-kernel


def _vq_kernel(z_ref, es_ref, et_ref, esq_ref, qt_ref, idx_ref, sse_ref, *, hw_valid):
    """One (batch b, HW-tile i) grid step.

    z_ref   : (1, tm, D)   z rows (native dtype, cast to f32 here)
    es_ref  : (Kp, D) f32  codebook pre-scaled by -2 (padded rows = 0)
    et_ref  : (D, Kp) f32  unscaled codebook, transposed
    esq_ref : (Kp, 1) f32  ||e_k||^2, padded entries = 1e30 sentinel
    qt_ref  : (1, D, tm)   quantized rows, transposed (lane-dense store), z.dtype
    idx_ref : (1, 1, tm)   closest code per row, int32 (lane-dense store)
    sse_ref : (1, 1, 1)    per-tile partial sum of ||z - e_closest||^2
    """
    tm = z_ref.shape[1]
    kp = es_ref.shape[0]

    z = z_ref[0].astype(jnp.float32)        # (tm, D) in-kernel cast (VPU has slack)
    e_scaled = es_ref[...]                  # (Kp, D)  == -2 * E
    e_t = et_ref[...]                       # (D, Kp)
    e_sq = esq_ref[...]                     # (Kp, 1)

    # scores[k, m] = ||e_k||^2 - 2 <e_k, z_m>   (A @ B^T form on the MXU).
    # The per-row ||z_m||^2 term is constant over k and dropped from the argmin.
    cross_t = jax.lax.dot_general(
        e_scaled, z, (((1,), (1,)), ((), ())),
        preferred_element_type=jnp.float32)                    # (Kp, tm)
    scores = e_sq + cross_t                                    # (Kp, tm)

    min_scores = jnp.min(scores, axis=0, keepdims=True)        # (1, tm)

    # First-minimum tie-break, fully in int32 (matches torch / jnp argmin).
    iota_k = jax.lax.broadcasted_iota(jnp.int32, (kp, tm), 0)  # (Kp, tm)
    closest = jnp.min(jnp.where(scores == min_scores, iota_k, kp),
                      axis=0, keepdims=True)                    # (1, tm) int32
    idx_ref[0] = closest

    one_hot_t = (iota_k == closest).astype(jnp.float32)         # (Kp, tm)
    quantized_t = jnp.dot(e_t, one_hot_t,
                          preferred_element_type=jnp.float32)   # (D, tm)
    qt_ref[0] = quantized_t.astype(qt_ref.dtype)

    # SSE partial:  sum_m ||z_m - e_c(m)||^2 = sum_m ||z_m||^2 + sum_m min_scores_m
    z_sq = jnp.sum(z * z, axis=1, keepdims=True)                # (tm, 1)
    min_s = min_scores
    if hw_valid is not None:   # ragged last tile: mask padded (garbage) rows/lanes
        base = pl.program_id(1) * tm
        rows = base + jax.lax.broadcasted_iota(jnp.int32, (tm, 1), 0)
        lanes = base + jax.lax.broadcasted_iota(jnp.int32, (1, tm), 1)
        z_sq = jnp.where(rows < hw_valid, z_sq, 0.0)
        min_s = jnp.where(lanes < hw_valid, min_s, 0.0)
    sse = jnp.sum(z_sq) + jnp.sum(min_s)
    sse_ref[...] = jnp.full((1, 1, 1), sse, dtype=jnp.float32)


@functools.partial(jax.jit, static_argnames=("tm",))
def quantizer_forward(z, embeddings,
                      commitment_loss_factor=0.25,
                      quantization_loss_factor=1.0,
                      tm=None):
    """z: (B, H, W, D) NHWC; embeddings: (K, D).

    Returns (quantized_vector (B, D, H, W) in z.dtype,
             quantized_indices (B, 1, H, W) int32,
             loss scalar f32), matching the PyTorch forward semantics.
    """
    B, H, W, D = z.shape
    K = embeddings.shape[0]
    HW = H * W
    N = B * HW

    k_pad = _round_up(K, 128)   # fill MXU/VPU lanes; sentinel rows never win

    if tm is None:
        tm = _pick_tm(k_pad, D, jnp.dtype(z.dtype).itemsize, HW, B)
    else:
        tm = min(_round_up(int(tm), 128), _round_up(HW, 128))
        if tm >= HW:
            tm = HW
    n_tiles = pl.cdiv(HW, tm)
    hw_valid = HW if HW % tm != 0 else None

    # Free reshape (contiguous dim merge) — no HBM pass, no dtype change.
    z3 = z.reshape(B, HW, D)

    # Codebook-invariant prep (tiny), hoisted out of the per-tile body.
    e32 = embeddings.astype(jnp.float32)
    e_pad = jnp.zeros((k_pad, D), jnp.float32).at[:K].set(e32)
    e_scaled = -2.0 * e_pad                                    # fold -2 into MXU input
    e_t = e_pad.T                                              # (D, Kp), unscaled
    e_sq = jnp.full((k_pad, 1), 1e30, dtype=jnp.float32)
    e_sq = e_sq.at[:K, 0].set(jnp.sum(e32 * e32, axis=-1))

    # Single-buffer the constant codebook inputs once they are big enough to
    # matter (their index_map is constant, so no re-DMA is needed).
    const_kw = {}
    if k_pad * D * 4 > (1 << 20):
        const_kw = dict(pipeline_mode=pl.Buffered(1))

    kernel = functools.partial(_vq_kernel, hw_valid=hw_valid)

    q_out, idx_out, sse_parts = pl.pallas_call(
        kernel,
        out_shape=(
            jax.ShapeDtypeStruct((B, D, HW), z.dtype),             # quantized, NCHW-flat
            jax.ShapeDtypeStruct((B, 1, HW), jnp.int32),           # closest index
            jax.ShapeDtypeStruct((B * n_tiles, 1, 1), jnp.float32) # per-tile SSE
        ),
        grid_spec=pltpu.PrefetchScalarGridSpec(
            num_scalar_prefetch=0,
            grid=(B, n_tiles),
            in_specs=[
                pl.BlockSpec((1, tm, D), lambda b, i: (b, i, 0)),            # z rows
                pl.BlockSpec((k_pad, D), lambda b, i: (0, 0), **const_kw),   # -2*E
                pl.BlockSpec((D, k_pad), lambda b, i: (0, 0), **const_kw),   # E^T
                pl.BlockSpec((k_pad, 1), lambda b, i: (0, 0), **const_kw),   # ||E||^2
            ],
            out_specs=(
                pl.BlockSpec((1, D, tm), lambda b, i: (b, 0, i)),            # lane-dense
                pl.BlockSpec((1, 1, tm), lambda b, i: (b, 0, i)),            # lane-dense
                pl.BlockSpec((1, 1, 1), lambda b, i: (b * n_tiles + i, 0, 0)),
            ),
        ),
        compiler_params=pltpu.CompilerParams(
            dimension_semantics=("parallel", "parallel"),   # disjoint per-tile outputs
            vmem_limit_bytes=32 * 1024 * 1024),
    )(z3, e_scaled, e_t, e_sq)

    # Losses: commitment / embedding MSE have identical forward values.
    sse = jnp.maximum(jnp.sum(sse_parts), 0.0)
    mse = sse / jnp.float32(N * D)
    loss = mse * commitment_loss_factor + mse * quantization_loss_factor

    # Free reshapes only — the kernel already emitted (B, D, HW) / (B, 1, HW).
    quantized_nchw = q_out.reshape(B, D, H, W)
    # NOTE: torch.argmin gives int64; int32 is used here.
    quantized_indices = idx_out.reshape(B, 1, H, W)

    return quantized_nchw, quantized_indices, loss


def _reference(z, embeddings, cf, qf):
    """Pure-JAX reference with the same math as the PyTorch forward."""
    B, H, W, D = z.shape
    zf = z.reshape(-1, D).astype(jnp.float32)
    e = embeddings.astype(jnp.float32)
    d = (zf ** 2).sum(-1, keepdims=True) + (e ** 2).sum(-1) - 2.0 * zf @ e.T
    closest = jnp.argmin(d, axis=-1)
    quant = e[closest]
    mse = jnp.mean((quant - zf) ** 2)
    loss = mse * cf + mse * qf
    q_nchw = jnp.transpose(quant.reshape(B, H, W, D), (0, 3, 1, 2))
    idx = closest.reshape(B, H, W)[:, None, :, :].astype(jnp.int32)
    return q_nchw, idx, loss


if __name__ == "__main__":
    # Small config: embedding_dim=32, num_embeddings=64, B=2, 16x16 spatial.
    embedding_dim = 32
    num_embeddings = 64
    B, Hs, Ws = 2, 16, 16

    key = jax.random.PRNGKey(0)
    kz, ke, kz2 = jax.random.split(key, 3)

    # nn.Embedding weight initialized uniform(-1/K, 1/K)
    embeddings = jax.random.uniform(
        ke, (num_embeddings, embedding_dim), dtype=jnp.float32,
        minval=-1.0 / num_embeddings, maxval=1.0 / num_embeddings)

    # z in NHWC with C = embedding_dim (the layout the module consumes).
    z = jax.random.normal(kz, (B, Hs, Ws, embedding_dim), dtype=jnp.float32)

    quantized, indices, loss = quantizer_forward(
        z, embeddings,
        commitment_loss_factor=0.25,
        quantization_loss_factor=1.0)
    jax.block_until_ready((quantized, indices, loss))

    ref_q, ref_idx, ref_loss = _reference(z, embeddings, 0.25, 1.0)

    assert quantized.shape == (B, embedding_dim, Hs, Ws)
    assert indices.shape == (B, 1, Hs, Ws)
    assert loss.shape == ()
    assert float(jnp.mean(jnp.abs(quantized - ref_q))) < 1e-3
    assert abs(float(loss) - float(ref_loss)) < 1e-3 * max(1.0, abs(float(ref_loss)))
    assert float(jnp.mean((indices == ref_idx).astype(jnp.float32))) > 0.99

    # Second config exercises the ragged-tile + masked-SSE path (HW=144, tm=128)
    # and the B==1 grid-splitting rule.
    z2 = jax.random.normal(kz2, (1, 12, 12, embedding_dim), dtype=jnp.float32)
    q2, i2, l2 = quantizer_forward(z2, embeddings, 0.25, 1.0, tm=128)
    jax.block_until_ready((q2, i2, l2))
    ref_q2, ref_idx2, ref_l2 = _reference(z2, embeddings, 0.25, 1.0)

    assert q2.shape == (1, embedding_dim, 12, 12)
    assert i2.shape == (1, 1, 12, 12)
    assert float(jnp.mean(jnp.abs(q2 - ref_q2))) < 1e-3
    assert abs(float(l2) - float(ref_l2)) < 1e-3 * max(1.0, abs(float(ref_l2)))
    assert float(jnp.mean((i2 == ref_idx2).astype(jnp.float32))) > 0.98

    print("KERNEL_OK")
</pallas_src>

<mosaic_0001>
module attributes {stable_mosaic.version = 11 : i64} {
  func.func @_vq_kernel(%arg0: i32, %arg1: i32, %arg2: memref<1x256x32xf32, #tpu.memory_space<vmem>>, %arg3: memref<128x32xf32, #tpu.memory_space<vmem>>, %arg4: memref<32x128xf32, #tpu.memory_space<vmem>>, %arg5: memref<128x1xf32, #tpu.memory_space<vmem>>, %arg6: memref<1x32x256xf32, #tpu.memory_space<vmem>>, %arg7: memref<1x1x256xi32, #tpu.memory_space<vmem>>, %arg8: memref<1x1x1xf32, #tpu.memory_space<vmem>>) attributes {dimension_semantics = [#tpu.dimension_semantics<parallel>, #tpu.dimension_semantics<parallel>], iteration_bounds = array<i64: 2, 1>, scalar_prefetch = 0 : i64, scratch_operands = 0 : i64, tpu.core_type = #tpu.core_type<tc>, window_params = [{transform_indices = @transform_0, window_bounds = array<i64: 1, 256, 32>}, {pipeline_mode = #tpu.pipeline_mode<synchronous>, transform_indices = @transform_1, window_bounds = array<i64: 128, 32>}, {pipeline_mode = #tpu.pipeline_mode<synchronous>, transform_indices = @transform_2, window_bounds = array<i64: 32, 128>}, {pipeline_mode = #tpu.pipeline_mode<synchronous>, transform_indices = @transform_3, window_bounds = array<i64: 128, 1>}, {transform_indices = @transform_4, window_bounds = array<i64: 1, 32, 256>}, {transform_indices = @transform_5, window_bounds = array<i64: 1, 1, 256>}, {transform_indices = @transform_6, window_bounds = array<i64: 1, 1, 1>}]} {
    %c0 = arith.constant 0 : index
    %c0_0 = arith.constant 0 : index
    %c0_1 = arith.constant 0 : index
    %0 = vector.load %arg2[%c0, %c0_0, %c0_1] : memref<1x256x32xf32, #tpu.memory_space<vmem>>, vector<1x256x32xf32>
    %1 = vector.shape_cast %0 : vector<1x256x32xf32> to vector<256x32xf32>
    %c0_2 = arith.constant 0 : index
    %c0_3 = arith.constant 0 : index
    %2 = vector.load %arg3[%c0_2, %c0_3] : memref<128x32xf32, #tpu.memory_space<vmem>>, vector<128x32xf32>
    %c0_4 = arith.constant 0 : index
    %c0_5 = arith.constant 0 : index
    %3 = vector.load %arg4[%c0_4, %c0_5] : memref<32x128xf32, #tpu.memory_space<vmem>>, vector<32x128xf32>
    %c0_6 = arith.constant 0 : index
    %c0_7 = arith.constant 0 : index
    %4 = vector.load %arg5[%c0_6, %c0_7] : memref<128x1xf32, #tpu.memory_space<vmem>>, vector<128x1xf32>
    %cst = arith.constant dense<0.000000e+00> : vector<128x256xf32>
    %5 = tpu.matmul %2, %1, %cst {dimension_numbers = #tpu.dot_dimension_numbers<[1], [1], [0], [0], [0, 0, 1, 0], [], []>} : vector<128x32xf32>, vector<256x32xf32>, vector<128x256xf32> -> vector<128x256xf32>
    %6 = vector.broadcast %4 : vector<128x1xf32> to vector<128x256xf32>
    %7 = arith.addf %6, %5 : vector<128x256xf32>
    %cst_8 = arith.constant dense<0x7F800000> : vector<256xf32>
    %8 = vector.multi_reduction <minimumf>, %7, %cst_8 [0] : vector<128x256xf32> to vector<256xf32>
    %9 = vector.shape_cast %8 : vector<256xf32> to vector<1x256xf32>
    %10 = tpu.iota {dimensions = array<i32: 0>} : vector<128x256xi32>
    %11 = vector.broadcast %9 : vector<1x256xf32> to vector<128x256xf32>
    %12 = arith.cmpf oeq, %7, %11 : vector<128x256xf32>
    %c128_i32 = arith.constant 128 : i32
    %13 = vector.broadcast %c128_i32 : i32 to vector<128x256xi32>
    %14 = arith.select %12, %10, %13 : vector<128x256xi1>, vector<128x256xi32>
    %cst_9 = arith.constant dense<2147483647> : vector<256xi32>
    %15 = vector.multi_reduction <minsi>, %14, %cst_9 [0] : vector<128x256xi32> to vector<256xi32>
    %16 = vector.shape_cast %15 : vector<256xi32> to vector<1x256xi32>
    %c0_10 = arith.constant 0 : index
    %c0_11 = arith.constant 0 : index
    %c0_12 = arith.constant 0 : index
    %17 = vector.load %arg7[%c0_10, %c0_11, %c0_12] : memref<1x1x256xi32, #tpu.memory_space<vmem>>, vector<1x1x256xi32>
    %18 = vector.shape_cast %17 : vector<1x1x256xi32> to vector<1x256xi32>
    %19 = vector.shape_cast %16 : vector<1x256xi32> to vector<1x1x256xi32>
    tpu.vector_store %arg7[%c0_10, %c0_11, %c0_12], %19 {strides = array<i32>} : memref<1x1x256xi32, #tpu.memory_space<vmem>>, vector<1x1x256xi32>,
    %20 = vector.broadcast %16 : vector<1x256xi32> to vector<128x256xi32>
    %21 = arith.cmpi eq, %10, %20 : vector<128x256xi32>
    %22 = arith.extui %21 : vector<128x256xi1> to vector<128x256xi32>
    %23 = arith.sitofp %22 : vector<128x256xi32> to vector<128x256xf32>
    %cst_13 = arith.constant dense<0.000000e+00> : vector<32x256xf32>
    %24 = tpu.matmul %3, %23, %cst_13 {dimension_numbers = #tpu.dot_dimension_numbers<[1], [0], [0], [1], [0, 0, 1, 1], [], []>} : vector<32x128xf32>, vector<128x256xf32>, vector<32x256xf32> -> vector<32x256xf32>
    %c0_14 = arith.constant 0 : index
    %c0_15 = arith.constant 0 : index
    %c0_16 = arith.constant 0 : index
    %25 = vector.load %arg6[%c0_14, %c0_15, %c0_16] : memref<1x32x256xf32, #tpu.memory_space<vmem>>, vector<1x32x256xf32>
    %26 = vector.shape_cast %25 : vector<1x32x256xf32> to vector<32x256xf32>
    %27 = vector.shape_cast %24 : vector<32x256xf32> to vector<1x32x256xf32>
    tpu.vector_store %arg6[%c0_14, %c0_15, %c0_16], %27 {strides = array<i32>} : memref<1x32x256xf32, #tpu.memory_space<vmem>>, vector<1x32x256xf32>,
    %28 = arith.mulf %1, %1 : vector<256x32xf32>
    %cst_17 = arith.constant dense<0.000000e+00> : vector<256xf32>
    %29 = vector.multi_reduction <add>, %28, %cst_17 [1] : vector<256x32xf32> to vector<256xf32>
    %30 = vector.shape_cast %29 : vector<256xf32> to vector<256x1xf32>
    %31 = vector.shape_cast %30 : vector<256x1xf32> to vector<1x256x1xf32>
    %cst_18 = arith.constant dense<0.000000e+00> : vector<1xf32>
    %32 = vector.multi_reduction <add>, %31, %cst_18 [1, 2] : vector<1x256x1xf32> to vector<1xf32>
    %33 = vector.shape_cast %32 : vector<1xf32> to vector<1x1x1xf32>
    %34 = vector.extract %33[0, 0, 0] : f32 from vector<1x1x1xf32>
    %35 = vector.shape_cast %9 : vector<1x256xf32> to vector<1x1x256xf32>
    %cst_19 = arith.constant dense<0.000000e+00> : vector<1xf32>
    %36 = vector.multi_reduction <add>, %35, %cst_19 [1, 2] : vector<1x1x256xf32> to vector<1xf32>
    %37 = vector.shape_cast %36 : vector<1xf32> to vector<1x1x1xf32>
    %38 = vector.extract %37[0, 0, 0] : f32 from vector<1x1x1xf32>
    %39 = arith.addf %34, %38 : f32
    %40 = vector.broadcast %39 : f32 to vector<1x1x1xf32>
    %c0_20 = arith.constant 0 : index
    %c0_21 = arith.constant 0 : index
    %c0_22 = arith.constant 0 : index
    %41 = vector.load %arg8[%c0_20, %c0_21, %c0_22] : memref<1x1x1xf32, #tpu.memory_space<vmem>>, vector<1x1x1xf32>
    tpu.vector_store %arg8[%c0_20, %c0_21, %c0_22], %40 {strides = array<i32>} : memref<1x1x1xf32, #tpu.memory_space<vmem>>, vector<1x1x1xf32>,
    return
  }
  func.func @transform_0(%arg0: i32, %arg1: i32) -> (i32, i32, i32) {
    %c0_i32 = arith.constant 0 : i32
    %c0_i32_0 = arith.constant 0 : i32
    return %arg0, %arg1, %c0_i32 : i32, i32, i32
  }
  func.func @transform_1(%arg0: i32, %arg1: i32) -> (i32, i32) {
    %c0_i32 = arith.constant 0 : i32
    %c0_i32_0 = arith.constant 0 : i32
    %c0_i32_1 = arith.constant 0 : i32
    return %c0_i32, %c0_i32_0 : i32, i32
  }
  func.func @transform_2(%arg0: i32, %arg1: i32) -> (i32, i32) {
    %c0_i32 = arith.constant 0 : i32
    %c0_i32_0 = arith.constant 0 : i32
    %c0_i32_1 = arith.constant 0 : i32
    return %c0_i32, %c0_i32_0 : i32, i32
  }
  func.func @transform_3(%arg0: i32, %arg1: i32) -> (i32, i32) {
    %c0_i32 = arith.constant 0 : i32
    %c0_i32_0 = arith.constant 0 : i32
    %c0_i32_1 = arith.constant 0 : i32
    return %c0_i32, %c0_i32_0 : i32, i32
  }
  func.func @transform_4(%arg0: i32, %arg1: i32) -> (i32, i32, i32) {
    %c0_i32 = arith.constant 0 : i32
    %c0_i32_0 = arith.constant 0 : i32
    return %arg0, %c0_i32, %arg1 : i32, i32, i32
  }
  func.func @transform_5(%arg0: i32, %arg1: i32) -> (i32, i32, i32) {
    %c0_i32 = arith.constant 0 : i32
    %c0_i32_0 = arith.constant 0 : i32
    return %arg0, %c0_i32, %arg1 : i32, i32, i32
  }
  func.func @transform_6(%arg0: i32, %arg1: i32) -> (i32, i32, i32) {
    %c1_i32 = arith.constant 1 : i32
    %0 = arith.muli %arg0, %c1_i32 : i32
    %1 = arith.addi %0, %arg1 : i32
    %c0_i32 = arith.constant 0 : i32
    %c0_i32_0 = arith.constant 0 : i32
    %c0_i32_1 = arith.constant 0 : i32
    return %1, %c0_i32, %c0_i32_0 : i32, i32, i32
  }
}

</mosaic_0001>

<bundles_post_ra>
// kernel: quantizer_forward.1
= control target key start
LH: loop header
LB: loop body
LE: loop exit
PB: predicated region body
PF: predicated region fallthrough
CT: control target
= control target key end

     0   :  { %12 = vsyncpa [#allocation3], 0  ;;  %s2966_s0 = inlined_call_operand.hbm [shape: f32[2,256,32], index: 0, kind: input, shape index: {}]   ;;  %s2967_s1 = inlined_call_operand.vmem [shape: f32[128,32], index: 1, kind: input, shape index: {}]   ;;  %s2968_s2 = inlined_call_operand.vmem [shape: f32[32,128], index: 2, kind: input, shape index: {}]   ;;  %s2969_s3 = inlined_call_operand.vmem [shape: f32[128,1], index: 3, kind: input, shape index: {}]   ;;  %s2970_s4 = inlined_call_operand.vmem [shape: f32[2,32,256], index: 4, kind: output, shape index: {0}]   ;;  %s2971_s5 = inlined_call_operand.vmem [shape: s32[2,1,256], index: 5, kind: output, shape index: {1}]   ;;  %s2972_s6 = inlined_call_operand.vmem [shape: f32[2,1,1], index: 6, kind: output, shape index: {2}]  }
   0x1   :  { %14 = vsyncpa [#allocation3 + $0x1], 0  ;;  %s1910_s21 = smov 0   ;;  %s1912_s22 = smov 0  }
   0x2   :  { %s1914_s23 = smov 0   ;;  %s1916_s24 = smov 0  }
   0x3   :  { %s1918_s25 = smov 0   ;;  %s1920_s26 = smov 0  }
   0x4 LB: > { %s1547_s27 = sadd.s32 4294967295, %s1869_s26   ;;  %s32_s28 = sadd.s32 1, %s1865_s25  ;;  %s1869_s26 = sphi %s1920_s26, %s20_s26   ;;  %s1865_s25 = sphi %s1918_s25, %s2979_s25   ;;  %s1861_s24 = sphi %s1916_s24, %s2978_s24   ;;  %s1857_s23 = sphi %s1914_s23, %s2977_s23   ;;  %s1853_s22 = sphi %s1912_s22, %s2976_s22   ;;  %s1849_s21 = sphi %s1910_s21, %s2975_s21  }
   0x5   : > { %p34_p0 = scmp.ge.s32.totalorder %s32_s28, 2  ;;  %s41_s29 = sadd.s32 1, %s1857_s23 }
   0x6   : > { %p48_p1 = scmp.ne.s32.totalorder %s1857_s23, %s1853_s22  ;;  %p49_p2 = scmp.eq.s32.totalorder %s1869_s26, 0 }
   0x7   : > { %s2981_s28 = smov (%p34_p0, %s32_s28), 0  ;;  %p54_p4 = scmp.ne.s32.totalorder %s1853_s22, %s1849_s21 }
   0x8   : > { %p1946_p3 = por %p49_p2, %p48_p1  ;;  %s36_s7 = ssub.s32 %s1865_s25, %s2981_s28 }
   0x9   : > { %p55_p5 = scmp.eq.s32.totalorder %s1547_s27, 0  ;;  %p39_p6 = scmp.eq.s32.totalorder %s36_s7, 0 }
   0xa   : > { %p1733_p8 = scmp.lt.s32.totalorder %s1869_s26, 2  ;;  %s234_s10 = sand.u32 1, %s1857_s23  }
   0xb   : > { %p1953_p7 = por %p55_p5, %p54_p4  ;;  %s1689_s11 = sshll.u32 %s1865_s25, 8 }
   0xc   : > { %s1959_s9 = scalar_select %p39_p6, %s1857_s23, %s41_s29  }
   0xd   : > { %s1551_s12 = sshll.u32 %s234_s10, 8  ;;  %s245_s15 = scalar_lea.hbm %s2966_s0, %s1689_s11 }
   0xe   : > { %s246_s16 = sshll.u32 %s245_s15, 4  ;;  %s238_s17 = scalar_lea.vmem [#allocation2], %s1551_s12  ;;  %s247_s16 = int_to_ptr.hbm [resolvable:$true] %s246_s16 }
   0xf   : > { %s248_s18 = sshll.u32 %s238_s17, 4  ;;  %p1730_p9 = pnand %p1733_p8, %p1946_p3  ;;  %s249_s18 = int_to_ptr.vmem [resolvable:$true] %s248_s18 }
  0x10   : > { %p1554_p10 = scmp.ge.s32.totalorder %s1869_s26, 1  ;;  %p256_p11 = scmp.lt.s32.totalorder %s1869_s26, 3 }
  0x11   : > { %s235_s19 = scalar_lea.sflag [#allocation3], %s234_s10  ;;  %s1871_s20 = smov 128  }
  0x12   : > { %s1872_s21 = smov 8   ;;  %p257_p12 = pnand %p1554_p10, %p256_p11 }
  0x13   : > { %1732 = dma.hbm_to_vmem [thread:$0]  (!%p1730_p9), %s247_s16, 4096, %s249_s18, %s235_s19, %s1871_s20, %s1871_s20, %s1872_s21  }
  0x14   : > { %260 = sbr.rel (%p257_p12) target bundleno = 554 (0x22a), region = 36  ;;  %s262_s27 = sand.u32 (!%p257_p12), 1, %s1853_s22  }
  0x15   : > { %s1555_s29 = sshll.u32 (!%p257_p12), %s262_s27, 8  ;;  %s263_s7 = scalar_lea.sflag (!%p257_p12), [#allocation3], %s262_s27 }
  0x16   : > { %s1971_s11 = scalar_lea.vmem (!%p257_p12), [#allocation2], %s1555_s29 }
  0x19   : > { %1844 = dma.done.wait (%p1953_p7), %s263_s7, 4096  }
  0x1a   : > { %1846 = vsyncadd (%p1953_p7), %s263_s7, 4294963200  ;;  %v1873_v0 = vmov 0   ;;  %vm405_vm0 = vcmask 261120   ;;  %v1978_v1 = vld [vmem:[%s1971_s11 + $0x78] sm:$0xff]  ;;  %v1992_v3 = vld [vmem:[%s1971_s11 + $0x70] sm:$0xff]  ;;  %vm1291_vm1 = vcmask 7168  }
  0x1b   : > { %1788 = vset.pattern.permute.xlu2 %v1873_v0  ;;  %1786 = vset.pattern.permute.xlu0 %v1873_v0  ;;  %v1981_v2 = vld [vmem:[%s1971_s11 + $0xf8] sm:$0xff]  ;;  %v393_v4 = vld [vmem:[%s2969_s3 + $0x20] sm:$0xff]  ;;  %v1998_v5 = vld [vmem:[%s1971_s11 + $0xf0] sm:$0xff]  ;;  %p314_p13 = scmp.lt.s32.totalorder %s1861_s24, 1 }
  0x1c   : > { %1787 = vset.pattern.permute.xlu1 %v1873_v0  ;;  %1559 = vmatpush.xpose.msk.msra.mxu0 %vm405_vm0, %v1978_v1  ;;  %v389_v6 = vld [vmem:[%s2969_s3] sm:$0xff]  ;;  %v391_v7 = vld [vmem:[%s2969_s3 + $0x10] sm:$0xff]  ;;  %v2015_v8 = vld [vmem:[%s1971_s11 + $0x68] sm:$0xff] }
  0x1d   : > { %1691 = vmatpush.xpose.msk.msra.mxu2 %vm405_vm0, %v1978_v1  ;;  %1591 = vmatpush.xpose.msk.msra.mxu1 %vm405_vm0, %v1981_v2  ;;  %v2018_v9 = vld [vmem:[%s1971_s11 + $0xe8] sm:$0xff]  ;;  %v392_v12 = vld [vmem:[%s2969_s3 + $0x18] sm:$0xff]  ;;  %v2038_v13 = vld [vmem:[%s1971_s11 + $0x60] sm:$0xff]  ;;  %s2983_s24 = smov (!%p314_p13, %s1861_s24), 1 }
  0x1e   : > { %1707 = vmatpush.xpose.msk.msra.mxu3 %vm405_vm0, %v1981_v2  ;;  %702 = vperm.xlu2 %1788, %v393_v4   ;;  %v394_v10 = vld [vmem:[%s2969_s3 + $0x28] sm:$0xff]  ;;  %v2041_v14 = vld [vmem:[%s1971_s11 + $0xe0] sm:$0xff]  ;;  %v2052_v15 = vld [vmem:[%s1971_s11 + $0x58] sm:$0xff]  ;;  %s1558_s29 = sshll.u32 %s2983_s24, 1  ;;  %s335_s27 = scalar_lea.vmem %s2972_s6, %s2983_s24 }
  0x1f   : > { %682 = vperm.xlu0 %1786, %v389_v6   ;;  %692 = vperm.xlu1 %1787, %v391_v7   ;;  %v390_v11 = vld [vmem:[%s2969_s3 + $0x8] sm:$0xff]  ;;  %v2055_v16 = vld [vmem:[%s1971_s11 + $0xd8] sm:$0xff]  ;;  %v397_v17 = vld [vmem:[%s2969_s3 + $0x40] sm:$0xff]  ;;  %s330_s8 = scalar_lea.vmem %s2971_s5, %s1558_s29  ;;  %s1690_s7 = sshll.u32 %s2983_s24, 6 }
  0x20   : > { %1560 = vmatpush.xpose.msk.msra.mxu0 %vm405_vm0, %v1992_v3  ;;  %v395_v18 = vld [vmem:[%s2969_s3 + $0x30] sm:$0xff]  ;;  %v396_v19 = vld [vmem:[%s2969_s3 + $0x38] sm:$0xff]  ;;  %v2089_v22 = vld [vmem:[%s1971_s11 + $0x48] sm:$0xff]  ;;  %s321_s10 = scalar_lea.vmem %s2970_s4, %s1690_s7 }
  0x21   : > { %1692 = vmatpush.xpose.msk.msra.mxu2 %vm405_vm0, %v1992_v3  ;;  %1592 = vmatpush.xpose.msk.msra.mxu1 %vm405_vm0, %v1998_v5  ;;  %v2075_v20 = vld [vmem:[%s1971_s11 + $0x50] sm:$0xff]  ;;  %v2092_v23 = vld [vmem:[%s1971_s11 + $0xc8] sm:$0xff]  ;;  %v400_v24 = vld [vmem:[%s2969_s3 + $0x58] sm:$0xff] }
  0x22   : > { %1708 = vmatpush.xpose.msk.msra.mxu3 %vm405_vm0, %v1998_v5  ;;  %v2078_v21 = vld [vmem:[%s1971_s11 + $0xd0] sm:$0xff]  ;;  %v398_v25 = vld [vmem:[%s2969_s3 + $0x48] sm:$0xff]  ;;  %v2112_v27 = vld [vmem:[%s1971_s11 + $0x40] sm:$0xff] }
  0x23   : > { %v399_v26 = vld [vmem:[%s2969_s3 + $0x50] sm:$0xff]  ;;  %v2115_v28 = vld [vmem:[%s1971_s11 + $0xc0] sm:$0xff]  ;;  %v2126_v29 = vld [vmem:[%s1971_s11 + $0x38] sm:$0xff] }
  0x24   : > { %1561 = vmatpush.xpose.msk.msra.mxu0 %vm405_vm0, %v2015_v8  ;;  %v2129_v30 = vld [vmem:[%s1971_s11 + $0xb8] sm:$0xff]  ;;  %v403_v31 = vld [vmem:[%s2969_s3 + $0x70] sm:$0xff]  ;;  %v401_v32 = vld [vmem:[%s2969_s3 + $0x60] sm:$0xff] }
  0x25   : > { %1693 = vmatpush.xpose.msk.msra.mxu2 %vm405_vm0, %v2015_v8  ;;  %1593 = vmatpush.xpose.msk.msra.mxu1 %vm405_vm0, %v2018_v9  ;;  %v402_v33 = vld [vmem:[%s2969_s3 + $0x68] sm:$0xff]  ;;  %v2149_v34 = vld [vmem:[%s1971_s11 + $0x30] sm:$0xff]  ;;  %v404_v38 = vld [vmem:[%s2969_s3 + $0x78] sm:$0xff] }
  0x26   : > { %1709 = vmatpush.xpose.msk.msra.mxu3 %vm405_vm0, %v2018_v9  ;;  %707 = vperm.xlu2 %1788, %v394_v10   ;;  %v2152_v35 = vld [vmem:[%s1971_s11 + $0xb0] sm:$0xff]  ;;  %v2163_v36 = vld [vmem:[%s1971_s11 + $0x28] sm:$0xff]  ;;  %v341_v39 = vld [vmem:[%s1971_s11 + $0x20] sm:$0xff]  ;;  %v1169_v10 = vmul.f32 %v2149_v34, %v2149_v34 }
  0x27   : > { %687 = vperm.xlu0 %1786, %v390_v11   ;;  %697 = vperm.xlu1 %1787, %v392_v12   ;;  %v2166_v37 = vld [vmem:[%s1971_s11 + $0xa8] sm:$0xff]  ;;  %v2181_v40 = vld [vmem:[%s1971_s11 + $0xa0] sm:$0xff]  ;;  %v340_v41 = vld [vmem:[%s1971_s11 + $0x18] sm:$0xff]  ;;  %v1167_v61 = vmul.f32 %v341_v39, %v341_v39  ;;  %v1168_v7 = vmul.f32 %v2163_v36, %v2163_v36  ;;  %v1170_v11 = vmul.f32 %v2126_v29, %v2126_v29 }
  0x28   : > { %1562 = vmatpush.xpose.msk.msra.mxu0 %vm405_vm0, %v2038_v13  ;;  %v2191_v42 = vld [vmem:[%s1971_s11 + $0x98] sm:$0xff]  ;;  %v339_v43 = vld [vmem:[%s1971_s11 + $0x10] sm:$0xff]  ;;  %v338_v45 = vld [vmem:[%s1971_s11 + $0x8] sm:$0xff]  ;;  %v1166_v59 = vmul.f32 %v340_v41, %v340_v41 }
  0x29   : > { %1694 = vmatpush.xpose.msk.msra.mxu2 %vm405_vm0, %v2038_v13  ;;  %1594 = vmatpush.xpose.msk.msra.mxu1 %vm405_vm0, %v2041_v14  ;;  %v2201_v44 = vld [vmem:[%s1971_s11 + $0x90] sm:$0xff]  ;;  %v2211_v46 = vld [vmem:[%s1971_s11 + $0x88] sm:$0xff]  ;;  %v337_v47 = vld [vmem:[%s1971_s11] sm:$0xff]  ;;  %v1164_v53 = vmul.f32 %v338_v45, %v338_v45  ;;  %v1165_v60 = vmul.f32 %v339_v43, %v339_v43  ;;  %v1207_v0 = vsel %vm405_vm0, %v1167_v61, 0.0  ;;  %v1210_v12 = vsel %vm405_vm0, %v1168_v7, 0.0 }
  0x2a   : > { %1710 = vmatpush.xpose.msk.msra.mxu3 %vm405_vm0, %v2041_v14  ;;  %v2221_v48 = vld [vmem:[%s1971_s11 + $0x80] sm:$0xff]  ;;  %v379_v50 = vld [vmem:[%s2967_s1 + $0x50] sm:$0xff]  ;;  %v370_v51 = vld [vmem:[%s2967_s1 + $0x8] sm:$0xff]  ;;  %v1163_v54 = vmul.f32 %v337_v47, %v337_v47  ;;  %v1204_v62 = vsel %vm405_vm0, %v1166_v59, 0.0  ;;  %v1192_v7 = vmul.f32 %v2018_v9, %v2018_v9 }
  0x2b   : > { %v369_v49 = vld [vmem:[%s2967_s1] sm:$0xff]  ;;  %v380_v52 = vld [vmem:[%s2967_s1 + $0x58] sm:$0xff]  ;;  %v1198_v55 = vsel %vm405_vm0, %v1164_v53, 0.0  ;;  %v371_v57 = vld [vmem:[%s2967_s1 + $0x10] sm:$0xff]  ;;  %v1201_v63 = vsel %vm405_vm0, %v1165_v60, 0.0 }
  0x2c   : > { %1563 = vmatpush.xpose.msk.msra.mxu0 %vm405_vm0, %v2052_v15  ;;  %v1195_v56 = vsel %vm405_vm0, %v1163_v54, 0.0  ;;  %v381_v58 = vld [vmem:[%s2967_s1 + $0x60] sm:$0xff]  ;;  %v372_v4 = vld [vmem:[%s2967_s1 + $0x18] sm:$0xff]  ;;  %v382_v6 = vld [vmem:[%s2967_s1 + $0x68] sm:$0xff]  ;;  %v1185_v54 = vmul.f32 %v2152_v35, %v2152_v35 }
  0x2d   : > { %1695 = vmatpush.xpose.msk.msra.mxu2 %vm405_vm0, %v2052_v15  ;;  %1595 = vmatpush.xpose.msk.msra.mxu1 %vm405_vm0, %v2055_v16 }
  0x2e   : > { %1711 = vmatpush.xpose.msk.msra.mxu3 %vm405_vm0, %v2055_v16  ;;  %722 = vperm.xlu2 %1788, %v397_v17   ;;  %v1213_v17 = vsel %vm405_vm0, %v1169_v10, 0.0 }
  0x2f   : > { %712 = vperm.xlu0 %1786, %v395_v18   ;;  %717 = vperm.xlu1 %1787, %v396_v19   ;;  %v1216_v18 = vsel %vm405_vm0, %v1170_v11, 0.0  ;;  %v373_v19 = vld [vmem:[%s2967_s1 + $0x20] sm:$0xff] }
  0x30   : > { %1564 = vmatpush.xpose.msk.msra.mxu0 %vm405_vm0, %v2075_v20 }
  0x31   : > { %1696 = vmatpush.xpose.msk.msra.mxu2 %vm405_vm0, %v2075_v20  ;;  %1596 = vmatpush.xpose.msk.msra.mxu1 %vm405_vm0, %v2078_v21 }
  0x32   : > { %1712 = vmatpush.xpose.msk.msra.mxu3 %vm405_vm0, %v2078_v21 }
  0x34   : > { %1565 = vmatpush.xpose.msk.msra.mxu0 %vm405_vm0, %v2089_v22 }
  0x35   : > { %1697 = vmatpush.xpose.msk.msra.mxu2 %vm405_vm0, %v2089_v22  ;;  %1597 = vmatpush.xpose.msk.msra.mxu1 %vm405_vm0, %v2092_v23 }
  0x36   : > { %1713 = vmatpush.xpose.msk.msra.mxu3 %vm405_vm0, %v2092_v23  ;;  %737 = vperm.xlu2 %1788, %v400_v24   ;;  %v383_v24 = vld [vmem:[%s2967_s1 + $0x70] sm:$0xff] }
  0x37   : > { %727 = vperm.xlu0 %1786, %v398_v25   ;;  %732 = vperm.xlu1 %1787, %v399_v26   ;;  %v1171_v25 = vmul.f32 %v2112_v27, %v2112_v27  ;;  %v1172_v26 = vmul.f32 %v2089_v22, %v2089_v22  ;;  %v374_v22 = vld [vmem:[%s2967_s1 + $0x28] sm:$0xff] }
  0x38   : > { %1566 = vmatpush.xpose.msk.msra.mxu0 %vm405_vm0, %v2112_v27 }
  0x39   : > { %1698 = vmatpush.xpose.msk.msra.mxu2 %vm405_vm0, %v2112_v27  ;;  %1598 = vmatpush.xpose.msk.msra.mxu1 %vm405_vm0, %v2115_v28  ;;  %v1222_v27 = vsel %vm405_vm0, %v1172_v26, 0.0 }
  0x3a   : > { %1714 = vmatpush.xpose.msk.msra.mxu3 %vm405_vm0, %v2115_v28 }
  0x3c   : > { %1567 = vmatpush.xpose.msk.msra.mxu0 %vm405_vm0, %v2126_v29 }
  0x3d   : > { %1699 = vmatpush.xpose.msk.msra.mxu2 %vm405_vm0, %v2126_v29  ;;  %1599 = vmatpush.xpose.msk.msra.mxu1 %vm405_vm0, %v2129_v30  ;;  %v1173_v29 = vmul.f32 %v2075_v20, %v2075_v20  ;;  %v384_v20 = vld [vmem:[%s2967_s1 + $0x78] sm:$0xff] }
  0x3e   : > { %1715 = vmatpush.xpose.msk.msra.mxu3 %vm405_vm0, %v2129_v30  ;;  %752 = vperm.xlu2 %1788, %v403_v31   ;;  %v1219_v31 = vsel %vm405_vm0, %v1171_v25, 0.0 }
  0x3f   : > { %742 = vperm.xlu0 %1786, %v401_v32   ;;  %747 = vperm.xlu1 %1787, %v402_v33   ;;  %v1225_v32 = vsel %vm405_vm0, %v1173_v29, 0.0  ;;  %v1174_v33 = vmul.f32 %v2052_v15, %v2052_v15 }
  0x40   : > { %1568 = vmatpush.xpose.msk.msra.mxu0 %vm405_vm0, %v2149_v34 }
  0x41   : > { %1700 = vmatpush.xpose.msk.msra.mxu2 %vm405_vm0, %v2149_v34  ;;  %1600 = vmatpush.xpose.msk.msra.mxu1 %vm405_vm0, %v2152_v35  ;;  %v1175_v34 = vmul.f32 %v2038_v13, %v2038_v13  ;;  %v375_v13 = vld [vmem:[%s2967_s1 + $0x30] sm:$0xff] }
  0x42   : > { %1716 = vmatpush.xpose.msk.msra.mxu3 %vm405_vm0, %v2152_v35  ;;  %v1187_v35 = vmul.f32 %v2115_v28, %v2115_v28 }
  0x43   : > { %v1231_v15 = vsel %vm405_vm0, %v1175_v34, 0.0 }
  0x44   : > { %1569 = vmatpush.xpose.msk.msra.mxu0 %vm405_vm0, %v2163_v36  ;;  %v1267_v60 = vsel %vm405_vm0, %v1187_v35, 0.0 }
  0x45   : > { %1701 = vmatpush.xpose.msk.msra.mxu2 %vm405_vm0, %v2163_v36  ;;  %1601 = vmatpush.xpose.msk.msra.mxu1 %vm405_vm0, %v2166_v37  ;;  %v1176_v36 = vmul.f32 %v2015_v8, %v2015_v8  ;;  %v1177_v8 = vmul.f32 %v1992_v3, %v1992_v3  ;;  %v376_v3 = vld [vmem:[%s2967_s1 + $0x38] sm:$0xff] }
  0x46   : > { %1717 = vmatpush.xpose.msk.msra.mxu3 %vm405_vm0, %v2166_v37 }
  0x47   : > { %757 = vperm.xlu0 %1786, %v404_v38   ;;  %v1228_v38 = vsel %vm405_vm0, %v1174_v33, 0.0 }
  0x48   : > { %1570 = vmatpush.xpose.msk.msra.mxu0 %vm405_vm0, %v341_v39 }
  0x49   : > { %1702 = vmatpush.xpose.msk.msra.mxu2 %vm405_vm0, %v341_v39  ;;  %1602 = vmatpush.xpose.msk.msra.mxu1 %vm405_vm0, %v2181_v40  ;;  %v1234_v39 = vsel %vm405_vm0, %v1176_v36, 0.0 }
  0x4a   : > { %1718 = vmatpush.xpose.msk.msra.mxu3 %vm405_vm0, %v2181_v40 }
  0x4c   : > { %1571 = vmatpush.xpose.msk.msra.mxu0 %vm405_vm0, %v340_v41 }
  0x4d   : > { %1703 = vmatpush.xpose.msk.msra.mxu2 %vm405_vm0, %v340_v41  ;;  %1603 = vmatpush.xpose.msk.msra.mxu1 %vm405_vm0, %v2191_v42  ;;  %v1178_v41 = vmul.f32 %v1978_v1, %v1978_v1  ;;  %v1180_v1 = vmul.f32 %v2211_v46, %v2211_v46 }
  0x4e   : > { %1719 = vmatpush.xpose.msk.msra.mxu3 %vm405_vm0, %v2191_v42 }
  0x50   : > { %1572 = vmatpush.xpose.msk.msra.mxu0 %vm405_vm0, %v339_v43 }
  0x51   : > { %1704 = vmatpush.xpose.msk.msra.mxu2 %vm405_vm0, %v339_v43  ;;  %1604 = vmatpush.xpose.msk.msra.mxu1 %vm405_vm0, %v2201_v44  ;;  %v1179_v43 = vmul.f32 %v2221_v48, %v2221_v48 }
  0x52   : > { %1720 = vmatpush.xpose.msk.msra.mxu3 %vm405_vm0, %v2201_v44 }
  0x54   : > { %1573 = vmatpush.xpose.msk.msra.mxu0 %vm405_vm0, %v338_v45 }
  0x55   : > { %1705 = vmatpush.xpose.msk.msra.mxu2 %vm405_vm0, %v338_v45  ;;  %1605 = vmatpush.xpose.msk.msra.mxu1 %vm405_vm0, %v2211_v46  ;;  %v1237_v45 = vsel %vm405_vm0, %v1177_v8, 0.0 }
  0x56   : > { %1721 = vmatpush.xpose.msk.msra.mxu3 %vm405_vm0, %v2211_v46  ;;  %v377_v46 = vld [vmem:[%s2967_s1 + $0x40] sm:$0xff] }
  0x58   : > { %1574 = vmatpush.xpose.msk.msra.mxu0 %vm405_vm0, %v337_v47 }
  0x59   : > { %1706 = vmatpush.xpose.msk.msra.mxu2 %vm405_vm0, %v337_v47  ;;  %1606 = vmatpush.xpose.msk.msra.mxu1 %vm405_vm0, %v2221_v48  ;;  %v1240_v47 = vsel %vm405_vm0, %v1178_v41, 0.0 }
  0x5a   : > { %1722 = vmatpush.xpose.msk.msra.mxu3 %vm405_vm0, %v2221_v48  ;;  %v1181_v48 = vmul.f32 %v2201_v44, %v2201_v44  ;;  %v1183_v44 = vmul.f32 %v2181_v40, %v2181_v40  ;;  %v378_v40 = vld [vmem:[%s2967_s1 + $0x48] sm:$0xff] }
  0x5b   : > { %1575 = vmatmul.msk.f32.vlgmr.msra.gmra.mxu0 %vm405_vm0, %v369_v49 }
  0x5c   : > { %1585 = vmatmul.msk.f32.vlgmr.msra.gmra.mxu2 %vm405_vm0, %v379_v50  ;;  %1607 = vmatmul.msk.f32.vlgmr.msra.gmra.mxu1 %vm405_vm0, %v369_v49  ;;  %v1243_v49 = vsel %vm405_vm0, %v1179_v43, 0.0 }
  0x5d   : > { %1617 = vmatmul.msk.f32.vlgmr.msra.gmra.mxu3 %vm405_vm0, %v379_v50  ;;  %v1182_v50 = vmul.f32 %v2191_v42, %v2191_v42  ;;  %v1184_v42 = vmul.f32 %v2166_v37, %v2166_v37  ;;  %v1186_v37 = vmul.f32 %v2129_v30, %v2129_v30  ;;  %v1189_v30 = vmul.f32 %v2078_v21, %v2078_v21 }
  0x5f   : > { %v1252_v53 = vsel %vm405_vm0, %v1182_v50, 0.0  ;;  %v1264_v59 = vsel %vm405_vm0, %v1186_v37, 0.0 }
  0x63   : > { %1576 = vmatmul.msk.f32.gmra.mxu0 %vm405_vm0, %v370_v51 }
  0x64   : > { %1586 = vmatmul.msk.f32.gmra.mxu2 %vm405_vm0, %v380_v52  ;;  %1608 = vmatmul.msk.f32.gmra.mxu1 %vm405_vm0, %v370_v51  ;;  %v1246_v51 = vsel %vm405_vm0, %v1180_v1, 0.0 }
  0x65   : > { %1618 = vmatmul.msk.f32.gmra.mxu3 %vm405_vm0, %v380_v52  ;;  %v1249_v52 = vsel %vm405_vm0, %v1181_v48, 0.0 }
  0x67   : > { %1199 = vadd.xlane.f32.xlu2 %v1198_v55  ;;  %v1255_v55 = vsel %vm405_vm0, %v1183_v44, 0.0 }
  0x69   : > { %1196 = vadd.xlane.f32.xlu1 %v1195_v56  ;;  %v1258_v56 = vsel %vm405_vm0, %v1184_v42, 0.0 }
  0x6b   : > { %1577 = vmatmul.msk.f32.gmra.mxu0 %vm405_vm0, %v371_v57 }
  0x6c   : > { %1587 = vmatmul.msk.f32.gmra.mxu2 %vm405_vm0, %v381_v58  ;;  %1609 = vmatmul.msk.f32.gmra.mxu1 %vm405_vm0, %v371_v57  ;;  %v1261_v57 = vsel %vm405_vm0, %v1185_v54, 0.0 }
  0x6d   : > { %1619 = vmatmul.msk.f32.gmra.mxu3 %vm405_vm0, %v381_v58  ;;  %v1188_v58 = vmul.f32 %v2092_v23, %v2092_v23  ;;  %v1190_v23 = vmul.f32 %v2055_v16, %v2055_v16  ;;  %v1193_v16 = vmul.f32 %v1998_v5, %v1998_v5 }
  0x6f   : > { %1205 = vadd.xlane.f32.xlu2 %v1204_v62  ;;  %v1270_v61 = vsel %vm405_vm0, %v1188_v58, 0.0 }
  0x71   : > { %1202 = vadd.xlane.f32.xlu0 %v1201_v63  ;;  %1208 = vadd.xlane.f32.xlu1 %v1207_v0  ;;  %v1191_v63 = vmul.f32 %v2041_v14, %v2041_v14  ;;  %v1194_v14 = vmul.f32 %v1981_v2, %v1981_v2 }
  0x73   : > { %1578 = vmatmul.msk.f32.gmra.mxu0 %vm405_vm0, %v372_v4  ;;  %v1279_v21 = vsel %vm405_vm0, %v1191_v63, 0.0  ;;  %v1288_v9 = vsel %vm405_vm0, %v1194_v14, 0.0 }
  0x74   : > { %1588 = vmatmul.msk.f32.gmra.mxu2 %vm405_vm0, %v382_v6  ;;  %1610 = vmatmul.msk.f32.gmra.mxu1 %vm405_vm0, %v372_v4  ;;  %v1273_v4 = vsel %vm405_vm0, %v1189_v30, 0.0 }
  0x75   : > { %1620 = vmatmul.msk.f32.gmra.mxu3 %vm405_vm0, %v382_v6  ;;  %v1276_v6 = vsel %vm405_vm0, %v1190_v23, 0.0 }
  0x77   : > { %1211 = vadd.xlane.f32.xlu2 %v1210_v12  ;;  %v1282_v12 = vsel %vm405_vm0, %v1192_v7, 0.0 }
  0x78   : > { %v2379_v28 = vpop.permute.xlu2 %702 }
  0x79   : > { %1214 = vadd.xlane.f32.xlu0 %v1213_v17  ;;  %1217 = vadd.xlane.f32.xlu1 %v1216_v18  ;;  %v1285_v18 = vsel %vm405_vm0, %v1193_v16, 0.0 }
  0x7b   : > { %1579 = vmatmul.msk.f32.gmra.mxu0 %vm405_vm0, %v373_v19 }
  0x7c   : > { %1589 = vmatmul.msk.f32.gmra.mxu2 %vm405_vm0, %v383_v24  ;;  %1611 = vmatmul.msk.f32.gmra.mxu1 %vm405_vm0, %v373_v19 }
  0x7d   : > { %1621 = vmatmul.msk.f32.gmra.mxu3 %vm405_vm0, %v383_v24 }
  0x7f   : > { %1220 = vadd.xlane.f32.xlu2 %v1219_v31 }
  0x80   : > { %v2398_v10 = vpop.permute.xlu2 %707 }
  0x81   : > { %1223 = vadd.xlane.f32.xlu0 %v1222_v27  ;;  %1226 = vadd.xlane.f32.xlu1 %v1225_v32 }
  0x83   : > { %1580 = vmatmul.msk.f32.gmra.mxu0 %vm405_vm0, %v374_v22 }
  0x84   : > { %1590 = vmatmul.msk.f32.gmra.mxu2 %vm405_vm0, %v384_v20  ;;  %1612 = vmatmul.msk.f32.gmra.mxu1 %vm405_vm0, %v374_v22 }
  0x85   : > { %1622 = vmatmul.msk.f32.gmra.mxu3 %vm405_vm0, %v384_v20 }
  0x87   : > { %1229 = vadd.xlane.f32.xlu2 %v1228_v38 }
  0x88   : > { %v2407_v19 = vpop.permute.xlu2 %722 }
  0x89   : > { %1232 = vadd.xlane.f32.xlu0 %v1231_v15  ;;  %1235 = vadd.xlane.f32.xlu1 %v1234_v39 }
  0x8b   : > { %1581 = vmatmul.msk.f32.gmra.mxu0 %vm405_vm0, %v375_v13 }
  0x8c   : > { %1613 = vmatmul.msk.f32.gmra.mxu1 %vm405_vm0, %v375_v13 }
  0x8f   : > { %1238 = vadd.xlane.f32.xlu2 %v1237_v45 }
  0x90   : > { %v2413_v24 = vpop.permute.xlu2 %737 }
  0x91   : > { %1241 = vadd.xlane.f32.xlu0 %v1240_v47  ;;  %1244 = vadd.xlane.f32.xlu1 %v1243_v49  ;;  %v2381_v62 = vpop.permute.xlu0 %682  ;;  %v2387_v0 = vpop.permute.xlu1 %692 }
  0x93   : > { %1582 = vmatmul.msk.f32.gmra.mxu0 %vm405_vm0, %v376_v3 }
  0x94   : > { %1614 = vmatmul.msk.f32.gmra.mxu1 %vm405_vm0, %v376_v3 }
  0x97   : > { %1247 = vadd.xlane.f32.xlu2 %v1246_v51 }
  0x98   : > { %v2419_v29 = vpop.permute.xlu2 %752 }
  0x99   : > { %1250 = vadd.xlane.f32.xlu0 %v1249_v52  ;;  %1253 = vadd.xlane.f32.xlu1 %v1252_v53  ;;  %v2400_v11 = vpop.permute.xlu0 %687  ;;  %v2403_v17 = vpop.permute.xlu1 %697 }
  0x9b   : > { %1583 = vmatmul.msk.f32.gmra.mxu0 %vm405_vm0, %v377_v46 }
  0x9c   : > { %1615 = vmatmul.msk.f32.gmra.mxu1 %vm405_vm0, %v377_v46 }
  0x9f   : > { %1256 = vadd.xlane.f32.xlu2 %v1255_v55 }
  0xa1   : > { %1259 = vadd.xlane.f32.xlu0 %v1258_v56  ;;  %1262 = vadd.xlane.f32.xlu1 %v1261_v57  ;;  %v2409_v5 = vpop.permute.xlu0 %712  ;;  %v2411_v2 = vpop.permute.xlu1 %717 }
  0xa3   : > { %1584 = vmatmul.msk.f32.gmra.mxu0 %vm405_vm0, %v378_v40 }
  0xa4   : > { %1616 = vmatmul.msk.f32.gmra.mxu1 %vm405_vm0, %v378_v40 }
  0xa7   : > { %1265 = vadd.xlane.f32.xlu2 %v1264_v59 }
  0xa9   : > { %1268 = vadd.xlane.f32.xlu0 %v1267_v60  ;;  %1271 = vadd.xlane.f32.xlu1 %v1270_v61  ;;  %v2415_v25 = vpop.permute.xlu0 %727  ;;  %v2417_v26 = vpop.permute.xlu1 %732 }
  0xaf   : > { %1274 = vadd.xlane.f32.xlu2 %v1273_v4 }
  0xb1   : > { %1277 = vadd.xlane.f32.xlu0 %v1276_v6  ;;  %1280 = vadd.xlane.f32.xlu1 %v1279_v21  ;;  %v2421_v31 = vpop.permute.xlu0 %742  ;;  %v2423_v27 = vpop.permute.xlu1 %747 }
  0xb7   : > { %1283 = vadd.xlane.f32.xlu2 %v1282_v12 }
  0xb9   : > { %1286 = vadd.xlane.f32.xlu0 %v1285_v18  ;;  %1289 = vadd.xlane.f32.xlu1 %v1288_v9  ;;  %v2429_v33 = vpop.permute.xlu0 %757 }
  0xd8   : > { %v2425_v32 = vpop.f32.mrf.mxu0 }
  0xd9   : > { %v2427_v22 = vpop.f32.mrf.mxu1 }
  0xda   : > { %v1200_v20 = vpop.xlane.xlu2 %1199 }
  0xdb   : > { %v1293_v36 = vsel %vm1291_vm1, %v1200_v20, 0.0 }
  0xdc   : > { %v1197_v34 = vpop.xlane.xlu1 %1196 }
  0xdd   : > { %v1292_v38 = vsel %vm1291_vm1, %v1197_v34, 0.0 }
  0xde   : > { %v1294_v13 = vadd.f32 %v1293_v36, %v1292_v38 }
  0xdf   : > { %v2449_v37 = vpop.f32.mrf.mxu2 }
  0xe0   : > { %v2433_v15 = vpop.f32.mrf.mxu0  ;;  %v2453_v59 = vpop.f32.mrf.mxu3 }
  0xe1   : > { %v2435_v39 = vpop.f32.mrf.mxu1 }
  0xe2   : > { %v1206_v8 = vpop.xlane.xlu2 %1205 }
  0xe3   : > { %v1297_v45 = vsel %vm1291_vm1, %v1206_v8, 0.0 }
  0xe4   : > { %v1203_v41 = vpop.xlane.xlu0 %1202  ;;  %v1209_v43 = vpop.xlane.xlu1 %1208 }
  0xe5   : > { %v1295_v47 = vsel %vm1291_vm1, %v1203_v41, 0.0  ;;  %v1299_v3 = vsel %vm1291_vm1, %v1209_v43, 0.0 }
  0xe6   : > { %v1296_v49 = vadd.f32 %v1295_v47, %v1294_v13 }
  0xe7   : > { %v2458_v12 = vpop.f32.mrf.mxu2 }
  0xe8   : > { %v2440_v1 = vpop.f32.mrf.mxu0  ;;  %v1298_v48 = vadd.f32 %v1297_v45, %v1296_v49  ;;  %v2461_v36 = vpop.f32.mrf.mxu3 }
  0xe9   : > { %v2442_v50 = vpop.f32.mrf.mxu1 }
  0xea   : > { %v1300_v51 = vadd.f32 %v1299_v3, %v1298_v48  ;;  %v1212_v52 = vpop.xlane.xlu2 %1211 }
  0xeb   : > { %v1301_v53 = vsel %vm1291_vm1, %v1212_v52, 0.0 }
  0xec   : > { %v1302_v46 = vadd.f32 %v1301_v53, %v1300_v51  ;;  %v1215_v44 = vpop.xlane.xlu0 %1214  ;;  %v1218_v42 = vpop.xlane.xlu1 %1217 }
  0xed   : > { %v1303_v54 = vsel %vm1291_vm1, %v1215_v44, 0.0  ;;  %v1305_v55 = vsel %vm1291_vm1, %v1218_v42, 0.0 }
  0xee   : > { %v1304_v56 = vadd.f32 %v1303_v54, %v1302_v46 }
  0xef   : > { %v603_v52 = vpop.f32.mrf.mxu2 }
  0xf0   : > { %v2447_v57 = vpop.f32.mrf.mxu0  ;;  %v1306_v40 = vadd.f32 %v1305_v55, %v1304_v56  ;;  %v668_v42 = vpop.f32.mrf.mxu3 }
  0xf1   : > { %v2451_v35 = vpop.f32.mrf.mxu1 }
  0xf2   : > { %v1221_v58 = vpop.xlane.xlu2 %1220 }
  0xf3   : > { %v1307_v60 = vsel %vm1291_vm1, %v1221_v58, 0.0 }
  0xf4   : > { %v1308_v61 = vadd.f32 %v1307_v60, %v1306_v40  ;;  %v1224_v30 = vpop.xlane.xlu0 %1223  ;;  %v1227_v23 = vpop.xlane.xlu1 %1226 }
  0xf5   : > { %v1309_v63 = vsel %vm1291_vm1, %v1224_v30, 0.0  ;;  %v1311_v4 = vsel %vm1291_vm1, %v1227_v23, 0.0 }
  0xf6   : > { %v1310_v6 = vadd.f32 %v1309_v63, %v1308_v61 }
  0xf8   : > { %v579_v21 = vpop.f32.mrf.mxu0  ;;  %v1312_v7 = vadd.f32 %v1311_v4, %v1310_v6  ;;  %v2475_v6 = vpop.f32.mrf.mxu2 }
  0xf9   : > { %v644_v16 = vpop.f32.mrf.mxu1 }
  0xfa   : > { %v1230_v14 = vpop.xlane.xlu2 %1229 }
  0xfb   : > { %v1313_v18 = vsel %vm1291_vm1, %v1230_v14, 0.0 }
  0xfc   : > { %v1314_v9 = vadd.f32 %v1313_v18, %v1312_v7  ;;  %v1233_v20 = vpop.xlane.xlu0 %1232  ;;  %v1236_v34 = vpop.xlane.xlu1 %1235  ;;  %v2479_v18 = vadd.f32 %v2387_v0, %v2440_v1  ;;  %v2497_v1 = vadd.f32 %v2381_v62, %v2427_v22 }
  0xfd   : > { %v1315_v38 = vsel %vm1291_vm1, %v1233_v20, 0.0  ;;  %v1317_v13 = vsel %vm1291_vm1, %v1236_v34, 0.0  ;;  %v2485_v34 = vadd.f32 %v2387_v0, %v2442_v50 }
  0xfe   : > { %v1316_v8 = vadd.f32 %v1315_v38, %v1314_v9  ;;  %v2481_v9 = vpop.f32.mrf.mxu3 }
 0x100   : > { %v2465_v41 = vpop.f32.mrf.mxu0  ;;  %v1318_v43 = vadd.f32 %v1317_v13, %v1316_v8  ;;  %v2489_v13 = vadd.f32 %v2381_v62, %v2425_v32  ;;  %v2492_v8 = vadd.f32 %v2379_v28, %v579_v21  ;;  %v813_v62 = vmin.f32 %v2497_v1, %v2485_v34 }
 0x101   : > { %v2467_v45 = vpop.f32.mrf.mxu1 }
 0x102   : > { %v1239_v47 = vpop.xlane.xlu2 %1238 }
 0x103   : > { %v1319_v49 = vsel %vm1291_vm1, %v1239_v47, 0.0  ;;  %v2500_v47 = vadd.f32 %v2379_v28, %v644_v16  ;;  %v2516_v16 = vadd.f32 %v2417_v26, %v2449_v37  ;;  %v2534_v37 = vadd.f32 %v2400_v11, %v2435_v39 }
 0x104   : > { %v1320_v3 = vadd.f32 %v1319_v49, %v1318_v43  ;;  %v1242_v48 = vpop.xlane.xlu0 %1241  ;;  %v1245_v51 = vpop.xlane.xlu1 %1244  ;;  %v2552_v39 = vadd.f32 %v2421_v31, %v668_v42 }
 0x105   : > { %v1321_v53 = vsel %vm1291_vm1, %v1242_v48, 0.0  ;;  %v1323_v46 = vsel %vm1291_vm1, %v1245_v51, 0.0 }
 0x106   : > { %v1322_v44 = vadd.f32 %v1321_v53, %v1320_v3  ;;  %v792_v3 = vmin.f32 %v2489_v13, %v2479_v18  ;;  %v2521_v53 = vadd.f32 %v2417_v26, %v2453_v59 }
 0x108   : > { %v585_v54 = vpop.f32.mrf.mxu0  ;;  %v1324_v55 = vadd.f32 %v1323_v46, %v1322_v44  ;;  %v794_v51 = vmin.f32 %v792_v3, %v2492_v8  ;;  %v2525_v46 = vadd.f32 %v2403_v17, %v2447_v57  ;;  %v815_v44 = vmin.f32 %v813_v62, %v2500_v47 }
 0x109   : > { %v650_v56 = vpop.f32.mrf.mxu1  ;;  %v2505_v32 = vadd.f32 %v2409_v5, %v585_v54  ;;  %v2541_v57 = vadd.f32 %v2421_v31, %v603_v52 }
 0x10a   : > { %v1248_v40 = vpop.xlane.xlu2 %1247  ;;  %v2512_v22 = vadd.f32 %v2409_v5, %v650_v56  ;;  %v609_v56 = vpop.f32.mrf.mxu2 }
 0x10b   : > { %v1325_v58 = vsel %vm1291_vm1, %v1248_v40, 0.0  ;;  %v796_v26 = vmin.f32 %v794_v51, %v2505_v32 }
 0x10c   : > { %v1326_v60 = vadd.f32 %v1325_v58, %v1324_v55  ;;  %v1251_v61 = vpop.xlane.xlu0 %1250  ;;  %v1254_v30 = vpop.xlane.xlu1 %1253  ;;  %v2530_v55 = vadd.f32 %v2400_v11, %v2433_v15  ;;  %v2545_v58 = vadd.f32 %v2403_v17, %v2451_v35  ;;  %v817_v15 = vmin.f32 %v815_v44, %v2512_v22 }
 0x10d   : > { %v1327_v23 = vsel %vm1291_vm1, %v1251_v61, 0.0  ;;  %v1329_v63 = vsel %vm1291_vm1, %v1254_v30, 0.0  ;;  %v674_v61 = vpop.f32.mrf.mxu3  ;;  %v2556_v30 = vadd.f32 %v2398_v10, %v2465_v41 }
 0x10e   : > { %v1328_v4 = vadd.f32 %v1327_v23, %v1326_v60  ;;  %v793_v17 = vmin.f32 %v2530_v55, %v2525_v46  ;;  %v2585_v3 = vadd.f32 %v2419_v29, %v674_v61  ;;  %v2607_v61 = vadd.f32 %v2413_v24, %v2461_v36 }
 0x110   : > { %v588_v7 = vpop.f32.mrf.mxu0  ;;  %v1330_v14 = vadd.f32 %v1329_v63, %v1328_v4 }
 0x111   : > { %v653_v20 = vpop.f32.mrf.mxu1  ;;  %v2568_v4 = vadd.f32 %v2411_v2, %v588_v7  ;;  %v795_v7 = vmin.f32 %v793_v17, %v2556_v30 }
 0x112   : > { %v1257_v38 = vpop.xlane.xlu2 %1256 }
 0x113   : > { %v1331_v43 = vsel %vm1291_vm1, %v1257_v38, 0.0 }
 0x114   : > { %v1332_v49 = vadd.f32 %v1331_v43, %v1330_v14  ;;  %v1260_v0 = vpop.xlane.xlu0 %1259  ;;  %v1263_v50 = vpop.xlane.xlu1 %1262  ;;  %v814_v43 = vmin.f32 %v2534_v37, %v2545_v58 }
 0x115   : > { %v1333_v21 = vsel %vm1291_vm1, %v1260_v0, 0.0  ;;  %v1335_v48 = vsel %vm1291_vm1, %v1263_v50, 0.0  ;;  %v2580_v0 = vadd.f32 %v2419_v29, %v609_v56 }
 0x116   : > { %v1334_v28 = vadd.f32 %v1333_v21, %v1332_v49 }
 0x118   : > { %v591_v54 = vpop.f32.mrf.mxu0  ;;  %v1336_v5 = vadd.f32 %v1335_v48, %v1334_v28 }
 0x119   : > { %v656_v59 = vpop.f32.mrf.mxu1  ;;  %v2538_v40 = vadd.f32 %v2407_v19, %v591_v54 }
 0x11a   : > { %v2549_v60 = vadd.f32 %v2407_v19, %v656_v59  ;;  %v1266_v11 = vpop.xlane.xlu2 %1265  ;;  %v2564_v19 = vadd.f32 %v2398_v10, %v2467_v45  ;;  %v2576_v10 = vadd.f32 %v2411_v2, %v653_v20  ;;  %v797_v20 = vmin.f32 %v795_v7, %v2568_v4  ;;  %v612_v59 = vpop.f32.mrf.mxu2 }
 0x11b   : > { %v798_v52 = vmin.f32 %v796_v26, %v2538_v40  ;;  %v1337_v23 = vsel %vm1291_vm1, %v1266_v11, 0.0  ;;  %v2601_v26 = vadd.f32 %v2413_v24, %v2458_v12  ;;  %v677_v12 = vpop.f32.mrf.mxu3  ;;  %v2619_v24 = vadd.f32 %v2423_v27, %v2481_v9 }
 0x11c   : > { %v819_v35 = vmin.f32 %v817_v15, %v2549_v60  ;;  %v1338_v31 = vadd.f32 %v1337_v23, %v1336_v5  ;;  %v1269_v42 = vpop.xlane.xlu0 %1268  ;;  %v1272_v63 = vpop.xlane.xlu1 %1271  ;;  %v816_v21 = vmin.f32 %v814_v43, %v2564_v19 }
 0x11d   : > { %v800_v41 = vmin.f32 %v798_v52, %v2516_v16  ;;  %v1339_v14 = vsel %vm1291_vm1, %v1269_v42, 0.0  ;;  %v1341_v38 = vsel %vm1291_vm1, %v1272_v63, 0.0 }
 0x11e   : > { %v821_v45 = vmin.f32 %v819_v35, %v2521_v53  ;;  %v1340_v49 = vadd.f32 %v1339_v14, %v1338_v31  ;;  %v818_v54 = vmin.f32 %v816_v21, %v2576_v10  ;;  %v2612_v35 = vadd.f32 %v2423_v27, %v2475_v6 }
 0x11f   : > { %v802_v50 = vmin.f32 %v800_v41, %v2541_v57  ;;  %v2623_v14 = vadd.f32 %v2429_v33, %v612_v59 }
 0x120   : > { %v823_v48 = vmin.f32 %v821_v45, %v2552_v39  ;;  %v594_v62 = vpop.f32.mrf.mxu0  ;;  %v1342_v2 = vadd.f32 %v1341_v38, %v1340_v49  ;;  %v2627_v38 = vadd.f32 %v2429_v33, %v677_v12 }
 0x121   : > { %v804_v28 = vmin.f32 %v802_v50, %v2580_v0  ;;  %v659_v51 = vpop.f32.mrf.mxu1  ;;  %v2592_v44 = vadd.f32 %v2415_v25, %v594_v62 }
 0x122   : > { %v825_v5 = vmin.f32 %v823_v48, %v2585_v3  ;;  %v2597_v29 = vadd.f32 %v2415_v25, %v659_v51  ;;  %v1275_v56 = vpop.xlane.xlu2 %1274 }
 0x123   : > { %v799_v15 = vmin.f32 %v797_v20, %v2592_v44  ;;  %v1343_v11 = vsel %vm1291_vm1, %v1275_v56, 0.0  ;;  %v834_v56 = vlaneseq }
 0x124   : > { %v820_v52 = vmin.f32 %v818_v54, %v2597_v29  ;;  %v1344_v23 = vadd.f32 %v1343_v11, %v1342_v2  ;;  %v1278_v17 = vpop.xlane.xlu0 %1277  ;;  %v1281_v25 = vpop.xlane.xlu1 %1280 }
 0x125   : > { %v801_v31 = vmin.f32 %v799_v15, %v2601_v26  ;;  %v1345_v42 = vsel %vm1291_vm1, %v1278_v17, 0.0  ;;  %v1347_v63 = vsel %vm1291_vm1, %v1281_v25, 0.0 }
 0x126   : > { %v822_v36 = vmin.f32 %v820_v52, %v2607_v61  ;;  %v1346_v41 = vadd.f32 %v1345_v42, %v1344_v23 }
 0x127   : > { %v803_v6 = vmin.f32 %v801_v31, %v2612_v35 }
 0x128   : > { %v824_v43 = vmin.f32 %v822_v36, %v2619_v24  ;;  %v1348_v45 = vadd.f32 %v1347_v63, %v1346_v41 }
 0x129   : > { %v805_v49 = vmin.f32 %v803_v6, %v2623_v14 }
 0x12a   : > { %v826_v7 = vmin.f32 %v824_v43, %v2627_v38  ;;  %v1284_v27 = vpop.xlane.xlu2 %1283 }
 0x12b   : > { %v806_v9 = vmin.f32 %v804_v28, %v805_v49  ;;  %v1349_v50 = vsel %vm1291_vm1, %v1284_v27, 0.0  ;;  %v2636_v28 = vshrl.u32 %v834_v56, 7 }
 0x12c   : > { %v827_v21 = vmin.f32 %v825_v5, %v826_v7  ;;  %v1350_v48 = vadd.f32 %v1349_v50, %v1348_v45  ;;  %v1287_v62 = vpop.xlane.xlu0 %1286  ;;  %v1290_v2 = vpop.xlane.xlu1 %1289 }
 0x12d   : > { %v807_v20 = vrot.slane %v806_v9, 4  ;;  %v1351_v51 = vsel %vm1291_vm1, %v1287_v62, 0.0  ;;  %v1353_v33 = vsel %vm1291_vm1, %v1290_v2, 0.0  ;;  %v2639_v42 = vadd.s32 8, %v2636_v28 }
 0x12e   : > { %v828_v54 = vrot.slane %v827_v21, 4  ;;  %v1352_v59 = vadd.f32 %v1351_v51, %v1350_v48  ;;  %v2642_v63 = vadd.s32 24, %v2636_v28  ;;  %v2645_v36 = vadd.s32 40, %v2636_v28 }
 0x12f   : > { %v808_v15 = vmin.f32 %v806_v9, %v807_v20  ;;  %v2648_v41 = vadd.s32 56, %v2636_v28  ;;  %v2651_v6 = vadd.s32 72, %v2636_v28  ;;  %v2658_v49 = vadd.s32 88, %v2636_v28 }
 0x130   : > { %v829_v11 = vmin.f32 %v827_v21, %v828_v54  ;;  %v1354_v52 = vadd.f32 %v1353_v33, %v1352_v59  ;;  %v2661_v7 = vadd.s32 104, %v2636_v28  ;;  %v2664_v27 = vadd.s32 16, %v2636_v28 }
 0x131   : > { %v809_v23 = vrot.slane %v808_v15, 2  ;;  %v2667_v9 = vadd.s32 32, %v2636_v28  ;;  %v2670_v50 = vadd.s32 48, %v2636_v28  ;;  %v2673_v21 = vadd.s32 64, %v2636_v28 }
 0x132   : > { %v830_v17 = vrot.slane %v829_v11, 2  ;;  %1355 = vadd.xlane.f32.xlu2 %v1354_v52  ;;  %v2676_v48 = vadd.s32 80, %v2636_v28  ;;  %v2685_v62 = vadd.s32 120, %v2636_v28 }
 0x133   : > { %v810_v5 = vmin.f32 %v808_v15, %v809_v23 }
 0x134   : > { %v831_v25 = vmin.f32 %v829_v11, %v830_v17 }
 0x135   : > { %v811_v12 = vrot.slane %v810_v5, 1 }
 0x136   : > { %v832_v31 = vrot.slane %v831_v25, 1 }
 0x137   : > { %v2653_v43 = vmin.f32 %v810_v5, %v811_v12 }
 0x138   : > { %v2655_v45 = vmin.f32 %v831_v25, %v832_v31 }
 0x139   : > { %vm853_vm7 = vcmp.eq.f32.partialorder %v2530_v55, %v2653_v43  ;;  %vm857_vm9 = vcmp.eq.f32.partialorder %v2525_v46, %v2653_v43  ;;  %vm861_vm10 = vcmp.eq.f32.partialorder %v2556_v30, %v2653_v43  ;;  %vm865_vm13 = vcmp.eq.f32.partialorder %v2568_v4, %v2653_v43 }
 0x13a   : > { %vm854_vm2 = vcmp.eq.f32.partialorder %v2534_v37, %v2655_v45  ;;  %vm858_vm3 = vcmp.eq.f32.partialorder %v2545_v58, %v2655_v45  ;;  %vm862_vm4 = vcmp.eq.f32.partialorder %v2564_v19, %v2655_v45  ;;  %vm866_vm5 = vcmp.eq.f32.partialorder %v2576_v10, %v2655_v45 }
 0x13b   : > { %vm878_vm6 = vcmp.eq.f32.partialorder %v2619_v24, %v2655_v45  ;;  %v886_v2 = vsel %vm854_vm2, %v2639_v42, 128  ;;  %vm870_vm8 = vcmp.eq.f32.partialorder %v2597_v29, %v2655_v45  ;;  %v890_v37 = vsel %vm858_vm3, %v2642_v63, 128 }
 0x13c   : > { %vm874_vm11 = vcmp.eq.f32.partialorder %v2607_v61, %v2655_v45  ;;  %v894_v58 = vsel %vm862_vm4, %v2645_v36, 128  ;;  %vm956_vm12 = vcmp.lt.s32.totalorder %v886_v2, %v890_v37  ;;  %v898_v55 = vsel %vm866_vm5, %v2648_v41, 128 }
 0x13d   : > { %v957_v19 = vsel %vm956_vm12, %v886_v2, %v890_v37  ;;  %vm877_vm14 = vcmp.eq.f32.partialorder %v2612_v35, %v2653_v43  ;;  %v885_v46 = vsel %vm853_vm7, %v2639_v42, 128  ;;  %v902_v10 = vsel %vm870_vm8, %v2651_v6, 128 }
 0x13e   : > { %vm960_vm15 = vcmp.lt.s32.totalorder %v957_v19, %v894_v58  ;;  %vm869_vm0 = vcmp.eq.f32.partialorder %v2592_v44, %v2653_v43  ;;  %v889_v29 = vsel %vm857_vm9, %v2642_v63, 128  ;;  %v906_v61 = vsel %vm874_vm11, %v2658_v49, 128 }
 0x13f   : > { %v910_v20 = vsel %vm878_vm6, %v2661_v7, 128  ;;  %v961_v51 = vsel %vm960_vm15, %v957_v19, %v894_v58  ;;  %vm873_vm1 = vcmp.eq.f32.partialorder %v2601_v26, %v2653_v43  ;;  %vm994_vm2 = vcmask 1040384  }
 0x140   : > { %vm964_vm3 = vcmp.lt.s32.totalorder %v961_v51, %v898_v55  ;;  %v893_v44 = vsel %vm861_vm10, %v2645_v36, 128  ;;  %vm917_vm4 = vcmp.lt.s32.totalorder %v885_v46, %v889_v29  ;;  %vm852_vm5 = vcmp.eq.f32.partialorder %v2497_v1, %v2655_v45 }
 0x141   : > { %v965_v33 = vsel %vm964_vm3, %v961_v51, %v898_v55  ;;  %v897_v24 = vsel %vm865_vm13, %v2648_v41, 128  ;;  %v901_v54 = vsel %vm869_vm0, %v2651_v6, 128  ;;  %v918_v59 = vsel %vm917_vm4, %v885_v46, %v889_v29 }
 0x142   : > { %vm968_vm6 = vcmp.lt.s32.totalorder %v965_v33, %v902_v10  ;;  %vm921_vm7 = vcmp.lt.s32.totalorder %v918_v59, %v893_v44  ;;  %vm856_vm8 = vcmp.eq.f32.partialorder %v2485_v34, %v2655_v45  ;;  %vm872_vm9 = vcmp.eq.f32.partialorder %v2521_v53, %v2655_v45 }
 0x143   : > { %v969_v30 = vsel %vm968_vm6, %v965_v33, %v902_v10  ;;  %v922_v15 = vsel %vm921_vm7, %v918_v59, %v893_v44  ;;  %vm876_vm10 = vcmp.eq.f32.partialorder %v2552_v39, %v2655_v45  ;;  %vm880_vm11 = vcmp.eq.f32.partialorder %v2585_v3, %v2655_v45 }
 0x144   : > { %vm972_vm12 = vcmp.lt.s32.totalorder %v969_v30, %v906_v61  ;;  %vm925_vm13 = vcmp.lt.s32.totalorder %v922_v15, %v897_v24  ;;  %vm860_vm15 = vcmp.eq.f32.partialorder %v2500_v47, %v2655_v45  ;;  %vm882_vm0 = vcmp.eq.f32.partialorder %v2627_v38, %v2655_v45 }
 0x145   : > { %v973_v34 = vsel %vm972_vm12, %v969_v30, %v906_v61  ;;  %v926_v4 = vsel %vm925_vm13, %v922_v15, %v897_v24  ;;  %v884_v11 = vsel %vm852_vm5, %v2636_v28, 128  ;;  %v888_v52 = vsel %vm856_vm8, %v2664_v27, 128 }
 0x146   : > { %vm976_vm3 = vcmp.lt.s32.totalorder %v973_v34, %v910_v20  ;;  %v905_v23 = vsel %vm873_vm1, %v2658_v49, 128  ;;  %vm929_vm4 = vcmp.lt.s32.totalorder %v926_v4, %v901_v54  ;;  %vm864_vm6 = vcmp.eq.f32.partialorder %v2512_v22, %v2655_v45 }
 0x147   : > { %v977_v47 = vsel %vm976_vm3, %v973_v34, %v910_v20  ;;  %v909_v38 = vsel %vm877_vm14, %v2661_v7, 128  ;;  %v930_v1 = vsel %vm929_vm4, %v926_v4, %v901_v54  ;;  %vm868_vm5 = vcmp.eq.f32.partialorder %v2549_v60, %v2655_v45 }
 0x148   : > { %vm933_vm7 = vcmp.lt.s32.totalorder %v930_v1, %v905_v23  ;;  %v892_v17 = vsel %vm860_vm15, %v2667_v9, 128  ;;  %v914_v26 = vsel %vm882_vm0, %v2685_v62, 128  ;;  %vm954_vm1 = vcmp.lt.s32.totalorder %v884_v11, %v888_v52 }
 0x149   : > { %v934_v5 = vsel %vm933_vm7, %v930_v1, %v905_v23  ;;  %v896_v25 = vsel %vm864_vm6, %v2670_v50, 128  ;;  %v955_v22 = vsel %vm954_vm1, %v884_v11, %v888_v52  ;;  %vm980_vm8 = vcmp.lt.s32.totalorder %v977_v47, %v914_v26 }
 0x14a   : > { %vm937_vm12 = vcmp.lt.s32.totalorder %v934_v5, %v909_v38  ;;  %vm958_vm13 = vcmp.lt.s32.totalorder %v955_v22, %v892_v17  ;;  %v981_v12 = vsel %vm980_vm8, %v977_v47, %v914_v26  ;;  %v1364_v35 = vsel %vm994_vm2, %v2653_v43, 0.0 }
 0x14b   : > { %v938_v31 = vsel %vm937_vm12, %v934_v5, %v909_v38  ;;  %v959_v2 = vsel %vm958_vm13, %v955_v22, %v892_v17  ;;  %v1365_v37 = vsel %vm994_vm2, %v2655_v45, 0.0  ;;  %vm851_vm14 = vcmp.eq.f32.partialorder %v2489_v13, %v2653_v43 }
 0x14c   : > { %v2771_v58 = vadd.s32 96, %v2636_v28  ;;  %vm962_vm15 = vcmp.lt.s32.totalorder %v959_v2, %v896_v25  ;;  %v1366_v55 = vadd.f32 %v1365_v37, %v1364_v35  ;;  %vm855_vm0 = vcmp.eq.f32.partialorder %v2479_v18, %v2653_v43 }
 0x14d   : > { %v2776_v19 = vadd.s32 112, %v2636_v28  ;;  %v900_v46 = vsel %vm868_vm5, %v2673_v21, 128  ;;  %v963_v10 = vsel %vm962_vm15, %v959_v2, %v896_v25  ;;  %vm871_vm3 = vcmp.eq.f32.partialorder %v2516_v16, %v2653_v43 }
 0x14e   : > { %vm966_vm4 = vcmp.lt.s32.totalorder %v963_v10, %v900_v46  ;;  %1367 = vadd.xlane.f32.xlu0 %v1366_v55  ;;  %vm875_vm6 = vcmp.eq.f32.partialorder %v2541_v57, %v2653_v43  ;;  %vm879_vm7 = vcmp.eq.f32.partialorder %v2580_v0, %v2653_v43  ;;  %vm881_vm1 = vcmp.eq.f32.partialorder %v2623_v14, %v2653_v43 }
 0x14f   : > { %v904_v18 = vsel %vm872_vm9, %v2676_v48, 128  ;;  %v967_v60 = vsel %vm966_vm4, %v963_v10, %v900_v46  ;;  %v883_v29 = vsel %vm851_vm14, %v2636_v28, 128  ;;  %v887_v61 = vsel %vm855_vm0, %v2664_v27, 128 }
 0x150   : > { %vm970_vm5 = vcmp.lt.s32.totalorder %v967_v60, %v904_v18  ;;  %vm859_vm8 = vcmp.eq.f32.partialorder %v2492_v8, %v2653_v43  ;;  %v908_v14 = vsel %vm876_vm10, %v2771_v58, 128  ;;  %v912_v53 = vsel %vm880_vm11, %v2776_v19, 128 }
 0x151   : > { %v971_v20 = vsel %vm970_vm5, %v967_v60, %v904_v18  ;;  %v913_v13 = vsel %vm881_vm1, %v2685_v62, 128  ;;  %vm863_vm12 = vcmp.eq.f32.partialorder %v2505_v32, %v2653_v43  ;;  %vm915_vm13 = vcmp.lt.s32.totalorder %v883_v29, %v887_v61 }
 0x152   : > { %vm974_vm9 = vcmp.lt.s32.totalorder %v971_v20, %v908_v14  ;;  %vm941_vm14 = vcmp.lt.s32.totalorder %v938_v31, %v913_v13  ;;  %v891_v51 = vsel %vm859_vm8, %v2667_v9, 128  ;;  %v916_v44 = vsel %vm915_vm13, %v883_v29, %v887_v61 }
 0x153   : > { %v975_v8 = vsel %vm974_vm9, %v971_v20, %v908_v14  ;;  %v942_v39 = vsel %vm941_vm14, %v938_v31, %v913_v13  ;;  %vm867_vm15 = vcmp.eq.f32.partialorder %v2538_v40, %v2653_v43  ;;  %vm919_vm0 = vcmp.lt.s32.totalorder %v916_v44, %v891_v51 }
 0x154   : > { %vm978_vm10 = vcmp.lt.s32.totalorder %v975_v8, %v912_v53  ;;  %v895_v45 = vsel %vm863_vm12, %v2670_v50, 128  ;;  %v920_v33 = vsel %vm919_vm0, %v916_v44, %v891_v51  ;;  %v899_v32 = vsel %vm867_vm15, %v2673_v21, 128 }
 0x155   : > { %v979_v3 = vsel %vm978_vm10, %v975_v8, %v912_v53  ;;  %vm923_vm4 = vcmp.lt.s32.totalorder %v920_v33, %v895_v45  ;;  %v903_v30 = vsel %vm871_vm3, %v2676_v48, 128  ;;  %v907_v34 = vsel %vm875_vm6, %v2771_v58, 128 }
 0x156   : > { %vm982_vm11 = vcmp.lt.s32.totalorder %v979_v3, %v981_v12  ;;  %v924_v54 = vsel %vm923_vm4, %v920_v33, %v895_v45  ;;  %v911_v16 = vsel %vm879_vm7, %v2776_v19, 128  ;;  %v1874_v43 = vmov 1.0  }
 0x157   : > { %v983_v24 = vsel %vm982_vm11, %v979_v3, %v981_v12  ;;  %vm927_vm1 = vcmp.lt.s32.totalorder %v924_v54, %v899_v32  ;;  %vm998_vm4 = vcmp.lt.s32.totalorder %v834_v56, 256  ;;  %v385_v56 = vld [vmem:[%s2968_s2] sm:$0xff] }
 0x158   : > { %v984_v59 = vrot.slane %v983_v24, 4  ;;  %v928_v15 = vsel %vm927_vm1, %v924_v54, %v899_v32 }
 0x159   : > { %vm931_vm8 = vcmp.lt.s32.totalorder %v928_v15, %v903_v30 }
 0x15a   : > { %vm985_vm5 = vcmp.lt.s32.totalorder %v983_v24, %v984_v59  ;;  %v932_v4 = vsel %vm931_vm8, %v928_v15, %v903_v30 }
 0x15b   : > { %v986_v40 = vsel %vm985_vm5, %v983_v24, %v984_v59  ;;  %vm935_vm9 = vcmp.lt.s32.totalorder %v932_v4, %v907_v34 }
 0x15c   : > { %v987_v11 = vrot.slane %v986_v40, 2  ;;  %v936_v52 = vsel %vm935_vm9, %v932_v4, %v907_v34 }
 0x15d   : > { %vm939_vm12 = vcmp.lt.s32.totalorder %v936_v52, %v911_v16 }
 0x15e   : > { %vm988_vm3 = vcmp.lt.s32.totalorder %v986_v40, %v987_v11  ;;  %v940_v47 = vsel %vm939_vm12, %v936_v52, %v911_v16 }
 0x15f   : > { %v989_v23 = vsel %vm988_vm3, %v986_v40, %v987_v11  ;;  %vm943_vm13 = vcmp.lt.s32.totalorder %v940_v47, %v942_v39 }
 0x160   : > { %v990_v38 = vrot.slane %v989_v23, 1  ;;  %v944_v1 = vsel %vm943_vm13, %v940_v47, %v942_v39 }
 0x161   : > { %v945_v57 = vrot.slane %v944_v1, 4 }
 0x162   : > { %vm991_vm14 = vcmp.lt.s32.totalorder %v989_v23, %v990_v38 }
 0x163   : > { %v2830_v17 = vsel %vm991_vm14, %v989_v23, %v990_v38  ;;  %vm946_vm6 = vcmp.lt.s32.totalorder %v944_v1, %v945_v57 }
 0x164   : > { %vm1032_vm10 = vcmp.eq.s32.totalorder %v2685_v62, %v2830_v17  ;;  %v947_v0 = vsel %vm946_vm6, %v944_v1, %v945_v57  ;;  %vm1030_vm7 = vcmp.eq.s32.totalorder %v2776_v19, %v2830_v17  ;;  %vm1028_vm0 = vcmp.eq.s32.totalorder %v2661_v7, %v2830_v17 }
 0x165   : > { %1671 = vmatpush.msk.msrb.mxu3 %vm1032_vm10, %v1874_v43  ;;  %v948_v26 = vrot.slane %v947_v0, 2  ;;  %v993_v25 = vrot.slane %v2830_v17, 7  ;;  %vm1026_vm11 = vcmp.eq.s32.totalorder %v2771_v58, %v2830_v17  ;;  %vm1024_vm5 = vcmp.eq.s32.totalorder %v2658_v49, %v2830_v17 }
 0x166   : > { %vm1022_vm9 = vcmp.eq.s32.totalorder %v2676_v48, %v2830_v17  ;;  %vm1020_vm12 = vcmp.eq.s32.totalorder %v2651_v6, %v2830_v17  ;;  %vm1018_vm14 = vcmp.eq.s32.totalorder %v2673_v21, %v2830_v17 }
 0x167   : > { %1672 = vmatpush.msk.msrb.mxu3 %vm1030_vm7, %v1874_v43  ;;  %vm949_vm15 = vcmp.lt.s32.totalorder %v947_v0, %v948_v26 }
 0x168   : > { %v950_v5 = vsel %vm949_vm15, %v947_v0, %v948_v26  ;;  %vm1016_vm15 = vcmp.eq.s32.totalorder %v2648_v41, %v2830_v17 }
 0x169   : > { %1673 = vmatpush.msk.msrb.mxu3 %vm1028_vm0, %v1874_v43  ;;  %v951_v22 = vrot.slane %v950_v5, 1 }
 0x16b   : > { %1674 = vmatpush.msk.msrb.mxu3 %vm1026_vm11, %v1874_v43  ;;  %vm952_vm1 = vcmp.lt.s32.totalorder %v950_v5, %v951_v22  ;;  %vm1014_vm11 = vcmp.eq.s32.totalorder %v2670_v50, %v2830_v17 }
 0x16c   : > { %v953_v12 = vsel %vm952_vm1, %v950_v5, %v951_v22  ;;  %vm1012_vm1 = vcmp.eq.s32.totalorder %v2645_v36, %v2830_v17 }
 0x16d   : > { %1675 = vmatpush.msk.msrb.mxu3 %vm1024_vm5, %v1874_v43  ;;  %v995_v35 = vsel %vm994_vm2, %v953_v12, %v993_v25  ;;  %vm1031_vm8 = vcmp.eq.s32.totalorder %v2685_v62, %v953_v12  ;;  %vm1029_vm3 = vcmp.eq.s32.totalorder %v2776_v19, %v953_v12  ;;  %vm1007_vm2 = vcmp.eq.s32.totalorder %v2642_v63, %v953_v12 }
 0x16e   : > { %1000 = vst.msk [vmem:[%s330_s8] sm:$0x3] %vm998_vm4, %v995_v35  ;;  %1655 = vmatpush.msk.msrb.mxu2 %vm1031_vm8, %v1874_v43  ;;  %vm1027_vm13 = vcmp.eq.s32.totalorder %v2661_v7, %v953_v12  ;;  %vm1005_vm6 = vcmp.eq.s32.totalorder %v2664_v27, %v953_v12  ;;  %vm1003_vm10 = vcmp.eq.s32.totalorder %v2639_v42, %v953_v12 }
 0x16f   : > { %1676 = vmatpush.msk.msrb.mxu3 %vm1022_vm9, %v1874_v43  ;;  %vm1025_vm7 = vcmp.eq.s32.totalorder %v2771_v58, %v953_v12  ;;  %vm1023_vm0 = vcmp.eq.s32.totalorder %v2658_v49, %v953_v12  ;;  %vm1021_vm4 = vcmp.eq.s32.totalorder %v2676_v48, %v953_v12  ;;  %vm1019_vm5 = vcmp.eq.s32.totalorder %v2651_v6, %v953_v12 }
 0x170   : > { %1656 = vmatpush.msk.msrb.mxu2 %vm1029_vm3, %v1874_v43  ;;  %vm1010_vm8 = vcmp.eq.s32.totalorder %v2667_v9, %v2830_v17  ;;  %vm1017_vm9 = vcmp.eq.s32.totalorder %v2673_v21, %v953_v12  ;;  %vm1008_vm3 = vcmp.eq.s32.totalorder %v2642_v63, %v2830_v17  ;;  %v387_v63 = vld [vmem:[%s2968_s2 + $0x10] sm:$0xff] }
 0x171   : > { %1677 = vmatpush.msk.msrb.mxu3 %vm1020_vm12, %v1874_v43  ;;  %vm1015_vm12 = vcmp.eq.s32.totalorder %v2648_v41, %v953_v12  ;;  %v388_v41 = vld [vmem:[%s2968_s2 + $0x18] sm:$0xff] }
 0x172   : > { %1657 = vmatpush.msk.msrb.mxu2 %vm1027_vm13, %v1874_v43  ;;  %vm1006_vm13 = vcmp.eq.s32.totalorder %v2664_v27, %v2830_v17 }
 0x173   : > { %1678 = vmatpush.msk.msrb.mxu3 %vm1018_vm14, %v1874_v43  ;;  %vm1013_vm14 = vcmp.eq.s32.totalorder %v2670_v50, %v953_v12 }
 0x174   : > { %1658 = vmatpush.msk.msrb.mxu2 %vm1025_vm7, %v1874_v43  ;;  %vm1004_vm7 = vcmp.eq.s32.totalorder %v2639_v42, %v2830_v17 }
 0x175   : > { %1679 = vmatpush.msk.msrb.mxu3 %vm1016_vm15, %v1874_v43  ;;  %vm1011_vm15 = vcmp.eq.s32.totalorder %v2645_v36, %v953_v12  ;;  %v386_v36 = vld [vmem:[%s2968_s2 + $0x8] sm:$0xff] }
 0x176   : > { %1659 = vmatpush.msk.msrb.mxu2 %vm1023_vm0, %v1874_v43  ;;  %vm1002_vm0 = vcmp.eq.s32.totalorder %v2636_v28, %v2830_v17 }
 0x177   : > { %1680 = vmatpush.msk.msrb.mxu3 %vm1014_vm11, %v1874_v43  ;;  %vm1009_vm11 = vcmp.eq.s32.totalorder %v2667_v9, %v953_v12 }
 0x178   : > { %1660 = vmatpush.msk.msrb.mxu2 %vm1021_vm4, %v1874_v43  ;;  %vm1001_vm4 = vcmp.eq.s32.totalorder %v2636_v28, %v953_v12 }
 0x179   : > { %1681 = vmatpush.msk.msrb.mxu3 %vm1012_vm1, %v1874_v43 }
 0x17a   : > { %1661 = vmatpush.msk.msrb.mxu2 %vm1019_vm5, %v1874_v43 }
 0x17b   : > { %1682 = vmatpush.msk.msrb.mxu3 %vm1010_vm8, %v1874_v43 }
 0x17c   : > { %1662 = vmatpush.msk.msrb.mxu2 %vm1017_vm9, %v1874_v43 }
 0x17d   : > { %1683 = vmatpush.msk.msrb.mxu3 %vm1008_vm3, %v1874_v43 }
 0x17e   : > { %1663 = vmatpush.msk.msrb.mxu2 %vm1015_vm12, %v1874_v43 }
 0x17f   : > { %1684 = vmatpush.msk.msrb.mxu3 %vm1006_vm13, %v1874_v43 }
 0x180   : > { %1664 = vmatpush.msk.msrb.mxu2 %vm1013_vm14, %v1874_v43 }
 0x181   : > { %1685 = vmatpush.msk.msrb.mxu3 %vm1004_vm7, %v1874_v43 }
 0x182   : > { %1665 = vmatpush.msk.msrb.mxu2 %vm1011_vm15, %v1874_v43 }
 0x183   : > { %1686 = vmatpush.msk.msrb.mxu3 %vm1002_vm0, %v1874_v43 }
 0x184   : > { %1142 = vmatmul.f32.vlgmr.msrb.gmra.mxu3 %v385_v56  ;;  %1666 = vmatpush.msk.msrb.mxu2 %vm1009_vm11, %v1874_v43 }
 0x186   : > { %1667 = vmatpush.msk.msrb.mxu2 %vm1007_vm2, %v1874_v43  ;;  %vm1378_vm2 = vcmask 0  }
 0x188   : > { %1668 = vmatpush.msk.msrb.mxu2 %vm1005_vm6, %v1874_v43 }
 0x18a   : > { %1669 = vmatpush.msk.msrb.mxu2 %vm1003_vm10, %v1874_v43 }
 0x18c   : > { %1145 = vmatmul.f32.gmra.mxu3 %v386_v36  ;;  %1670 = vmatpush.msk.msrb.mxu2 %vm1001_vm4, %v1874_v43 }
 0x18d   : > { %1113 = vmatmul.f32.vlgmr.msrb.gmra.mxu2 %v385_v56 }
 0x194   : > { %1148 = vmatmul.f32.gmra.mxu3 %v387_v63 }
 0x195   : > { %1116 = vmatmul.f32.gmra.mxu2 %v386_v36 }
 0x19c   : > { %1151 = vmatmul.f32.gmra.mxu3 %v388_v41 }
 0x19d   : > { %1119 = vmatmul.f32.gmra.mxu2 %v387_v63 }
 0x1a5   : > { %v1356_v42 = vpop.xlane.xlu2 %1355  ;;  %1122 = vmatmul.f32.gmra.mxu2 %v388_v41 }
 0x1a6   : > { %v1357_v6 = vrot.slane %v1356_v42, 4 }
 0x1a8   : > { %v1358_v28 = vadd.f32 %v1357_v6, %v1356_v42 }
 0x1aa   : > { %v1359_v49 = vrot.slane %v1358_v28, 2 }
 0x1ac   : > { %v1360_v7 = vadd.f32 %v1359_v49, %v1358_v28 }
 0x1ae   : > { %v1361_v27 = vrot.slane %v1360_v7, 1 }
 0x1b0   : > { %v1362_v9 = vadd.f32 %v1361_v27, %v1360_v7 }
 0x1b2   : > { %1723 = vpush %v1362_v9 }
 0x1c1   : > { %v1368_v50 = vpop.xlane.xlu0 %1367 }
 0x1c2   : > { %v1369_v21 = vrot.slane %v1368_v50, 4 }
 0x1c4   : > { %v1370_v48 = vadd.f32 %v1369_v21, %v1368_v50 }
 0x1c6   : > { %v1371_v62 = vrot.slane %v1370_v48, 2 }
 0x1c8   : > { %v1372_v31 = vadd.f32 %v1371_v62, %v1370_v48 }
 0x1ca   : > { %v1373_v2 = vrot.slane %v1372_v31, 1 }
 0x1cc   : > { %v1374_v37 = vadd.f32 %v1373_v2, %v1372_v31 }
 0x1ce   : > { %1725 = vpush %v1374_v37 }
 0x1e3   : > { %s1724_s18 = spop %1723 }
 0x1ff   : > { %s1726_s19 = spop %1725 }
 0x200   : > { %s1376_s29 = sadd.f32 %s1726_s19, %s1724_s18 }
 0x202   : > { %v1377_v58 = vstv %s1376_s29 }
 0x203   : > { %1379 = vst.msk [vmem:[%s335_s27] sm:$0x1] %vm1378_vm2, %v1377_v58 }
 0x207   : > { %v1143_v55 = vpop.f32.mrf.mxu3 }
 0x208   : > { %1156 = vst [vmem:[%s321_s10 + $0x8] sm:$0xff] %v1143_v55 }
 0x20f   : > { %v1146_v19 = vpop.f32.mrf.mxu3 }
 0x210   : > { %1158 = vst [vmem:[%s321_s10 + $0x18] sm:$0xff] %v1146_v19  ;;  %v1114_v46 = vpop.f32.mrf.mxu2 }
 0x211   : > { %1155 = vst [vmem:[%s321_s10] sm:$0xff] %v1114_v46 }
 0x217   : > { %v1149_v10 = vpop.f32.mrf.mxu3 }
 0x218   : > { %1160 = vst [vmem:[%s321_s10 + $0x28] sm:$0xff] %v1149_v10  ;;  %v1117_v18 = vpop.f32.mrf.mxu2 }
 0x219   : > { %1157 = vst [vmem:[%s321_s10 + $0x10] sm:$0xff] %v1117_v18 }
 0x21f   : > { %v1152_v60 = vpop.f32.mrf.mxu3 }
 0x220   : > { %1162 = vst [vmem:[%s321_s10 + $0x38] sm:$0xff] %v1152_v60  ;;  %v1120_v29 = vpop.f32.mrf.mxu2 }
 0x221   : > { %1159 = vst [vmem:[%s321_s10 + $0x20] sm:$0xff] %v1120_v29 }
 0x228   : > { %v1123_v61 = vpop.f32.mrf.mxu2 }
 0x229   : > { %1161 = vst [vmem:[%s321_s10 + $0x30] sm:$0xff] %v1123_v61 }
 0x22a PF: > { %s20_s26 = sadd.s32 1, %s1869_s26   ;;  %s2975_s21 = smov %s1853_s22 }
 0x22b   : > { %p17_p0 = scmp.ge.s32.totalorder %s20_s26, 4   ;;  %s2976_s22 = smov %s1857_s23 }
 0x22c   : > { %s2977_s23 = smov %s1959_s9  ;;  %s2978_s24 = smov %s1865_s25 }
 0x22d   : > { %s2979_s25 = smov %s2981_s28  ;;  %19 = sbr.rel (!%p17_p0) target bundleno = 4 (0x4), region = 100 }
 0x232   :  { %1448 = vsyncpa [#allocation3], 1 }
 0x233   :  { %1450 = vsyncpa [#allocation3 + $0x1], 1 }

</bundles_post_ra>
